<compile_context>
chip_gen: v7x
topology: tpu7x:2x2x1
jax: 0.10.0
libtpu: 0.0.40
codegen_flags: <defaults>
</compile_context>

<pallas_src>
import functools
import math

import jax
import jax.numpy as jnp
from jax import lax
from jax.experimental import pallas as pl
from jax.experimental.pallas import tpu as pltpu


def _round_up(a, m):
    return ((a + m - 1) // m) * m


def _bf16_vpu_available():
    """bf16 VALU exists on v6e/v7x; keep the epilogue in f32 on v5 and older."""
    try:
        kind = jax.devices()[0].device_kind.lower()
    except Exception:
        return True
    for tag in ("v2", "v3", "v4", "v5"):
        if tag in kind:
            return False
    return True


def _mlp_kernel(x_ref, w1_ref, w2_ref, b2_ref, w3t_ref, b3_ref, o_ref, *,
                bf16_epilogue):
    # layer 1: (bm, d_in+1)[bf16] @ (d_in+1, 128)[bf16] -> f32 accum.
    # b1 is folded into W1 via the constant-ones column appended to x.
    h = jnp.dot(x_ref[...], w1_ref[...], preferred_element_type=jnp.float32)
    if bf16_epilogue:
        # v6e/v7x: downcast + ReLU in bf16 (2x VPU rate on the (bm,128) tensor)
        h = jnp.maximum(h.astype(jnp.bfloat16), 0.0)
    else:
        # v5e: no bf16 VALU; ReLU in f32, cast only for the next MXU dot
        h = jnp.maximum(h, 0.0).astype(jnp.bfloat16)

    # layer 2: (bm,128)[bf16] @ (128,32)[bf16] -> f32 accum
    h = jnp.dot(h, w2_ref[...], preferred_element_type=jnp.float32)
    if bf16_epilogue:
        h = jnp.maximum(h.astype(jnp.bfloat16) + b2_ref[...], 0.0)
    else:
        h = jnp.maximum(h + b2_ref[...], 0.0).astype(jnp.bfloat16)

    # layer 3, transposed (NT) dot so the result lands lane-dense:
    # (1,32)[bf16] . (bm,32)[bf16]^T -> (1,bm) f32
    y = lax.dot_general(
        w3t_ref[...], h,
        dimension_numbers=(((1,), (1,)), ((), ())),
        preferred_element_type=jnp.float32)
    y = jax.nn.sigmoid(y + b3_ref[...])        # (1, bm) f32
    o_ref[...] = y[None].astype(o_ref.dtype)   # (1, 1, bm)


def cosine_predicting_layer(x, params, *, block_rows=2048):
    """x: (N, 2*embed_dim + 1) float32/bfloat16. Returns (N, 1) float32."""
    w1, b1, w2, b2, w3, b3 = params
    n, d_in = x.shape
    h1 = w1.shape[1]   # 128
    h2 = w2.shape[1]   # 32

    # --- row-tile selection -------------------------------------------------
    # Large tiles amortize the ~0.35us per-grid-step pipeline overhead; clamp
    # for small N so a huge tile doesn't compute mostly-padding rows; keep
    # >= 2 grid steps when possible so both v7x TensorCores get work.
    br = max(512, min(block_rows, _round_up(n, 512)))
    if n > 512 and pl.cdiv(n, br) < 2:
        br = max(512, _round_up(pl.cdiv(n, 2), 512))
    num_blocks = pl.cdiv(n, br)

    bf16_epilogue = _bf16_vpu_available()

    # --- operand preparation (one bf16 pass over x, b1 folded into W1) ------
    x_bf = jnp.concatenate(
        [x.astype(jnp.bfloat16), jnp.ones((n, 1), dtype=jnp.bfloat16)], axis=1)
    d_aug = d_in + 1
    w1_aug = jnp.concatenate(
        [w1, b1.reshape(1, h1)], axis=0).astype(jnp.bfloat16)      # (d_in+1, 128)
    w2_bf = w2.astype(jnp.bfloat16)                                # (128, 32)
    b2_k = b2.reshape(1, h2).astype(
        jnp.bfloat16 if bf16_epilogue else jnp.float32)            # (1, 32)
    w3_t = w3.T.reshape(1, h2).astype(jnp.bfloat16)                # (1, 32)
    b3_2d = b3.reshape(1, 1).astype(jnp.float32)                   # (1, 1)

    # --- scoped-VMEM limit: only raise when a large swept tile needs it -----
    est = (2 * br * _round_up(d_aug, 128) * 2        # x double-buffer (bf16, lane padded)
           + br * h1 * (4 + 2)                       # h1 f32 + bf16
           + br * _round_up(h2, 128) * (4 + 2)       # h2 f32 + bf16 (lane padded)
           + 2 * br * 4                              # output double-buffer
           + 2 * 1024 * 1024)                        # resident weights + slack
    vmem_limit = None
    if est > 12 * 1024 * 1024:
        vmem_limit = min(64 * 1024 * 1024, 2 * est)  # cap valid on v7x (64 MiB/TC)

    kernel = functools.partial(_mlp_kernel, bf16_epilogue=bf16_epilogue)

    out = pl.pallas_call(
        kernel,
        out_shape=jax.ShapeDtypeStruct((num_blocks, 1, br), jnp.float32),
        grid_spec=pltpu.PrefetchScalarGridSpec(
            num_scalar_prefetch=0,
            grid=(num_blocks,),
            in_specs=[
                pl.BlockSpec((br, d_aug), lambda i: (i, 0)),   # x tile (bf16)
                pl.BlockSpec((d_aug, h1), lambda i: (0, 0)),   # W1|b1 (bf16), resident
                pl.BlockSpec((h1, h2), lambda i: (0, 0)),      # W2 (bf16), resident
                pl.BlockSpec((1, h2), lambda i: (0, 0)),       # b2
                pl.BlockSpec((1, h2), lambda i: (0, 0)),       # W3^T (bf16)
                pl.BlockSpec((1, 1), lambda i: (0, 0)),        # b3 (f32)
            ],
            out_specs=pl.BlockSpec((1, 1, br), lambda i: (i, 0, 0)),
        ),
        compiler_params=pltpu.CompilerParams(
            dimension_semantics=("parallel",),
            vmem_limit_bytes=vmem_limit),
    )(x_bf, w1_aug, w2_bf, b2_k, w3_t, b3_2d)

    # (num_blocks, 1, br) -> (N, 1); trailing padded rows discarded.
    return out.reshape(-1)[:n].reshape(n, 1)


def init_params(key, embed_dim):
    """Deterministic init matching the PyTorch module:
       weights xavier_uniform (gain=sqrt(2) for hidden, 1 for output);
       biases U(-1/sqrt(fan_in), 1/sqrt(fan_in)) (PyTorch Linear default)."""
    d_in = embed_dim * 2 + 1
    dims = [(d_in, 128), (128, 32), (32, 1)]
    gains = [math.sqrt(2.0), math.sqrt(2.0), 1.0]
    keys = jax.random.split(key, 6)
    params = []
    for idx, ((fan_in, fan_out), gain) in enumerate(zip(dims, gains)):
        wbound = gain * math.sqrt(6.0 / (fan_in + fan_out))
        w = jax.random.uniform(keys[2 * idx], (fan_in, fan_out),
                               minval=-wbound, maxval=wbound, dtype=jnp.float32)
        bbound = 1.0 / math.sqrt(fan_in)
        b = jax.random.uniform(keys[2 * idx + 1], (1, fan_out),
                               minval=-bbound, maxval=bbound, dtype=jnp.float32)
        params.extend([w, b])
    return tuple(params)


def reference_forward(x, params):
    w1, b1, w2, b2, w3, b3 = params
    h = jnp.maximum(x @ w1 + b1, 0.0)
    h = jnp.maximum(h @ w2 + b2, 0.0)
    return jax.nn.sigmoid(h @ w3 + b3)


if __name__ == "__main__":
    key = jax.random.PRNGKey(0)
    embed_dim = 32                       # small, consistent with the module
    d_in = embed_dim * 2 + 1             # 65

    k_params, k_x = jax.random.split(key)
    params = init_params(k_params, embed_dim)

    # bf16 streams -> relax tolerance vs f32 reference
    atol = rtol = 2e-2

    # Case 1: N that splits into >= 2 parallel grid steps at the default tile.
    n1 = 2048
    x1 = jax.random.normal(k_x, (n1, d_in), dtype=jnp.float32)
    out1 = jax.block_until_ready(cosine_predicting_layer(x1, params))
    ref1 = reference_forward(x1, params)
    assert out1.shape == (n1, 1)
    assert jnp.allclose(out1, ref1, atol=atol, rtol=rtol), \
        f"max diff {jnp.max(jnp.abs(out1 - ref1))}"

    # Case 2: ragged N (tail block) -- no divisibility requirement.
    n2 = 1000
    x2 = x1[:n2]
    out2 = jax.block_until_ready(cosine_predicting_layer(x2, params))
    ref2 = reference_forward(x2, params)
    assert out2.shape == (n2, 1)
    assert jnp.allclose(out2, ref2, atol=atol, rtol=rtol), \
        f"max diff {jnp.max(jnp.abs(out2 - ref2))}"

    print("KERNEL_OK")
</pallas_src>

<mosaic_0001>
module attributes {stable_mosaic.version = 11 : i64} {
  func.func @_mlp_kernel(%arg0: i32, %arg1: memref<1024x66xbf16, #tpu.memory_space<vmem>>, %arg2: memref<66x128xbf16, #tpu.memory_space<vmem>>, %arg3: memref<128x32xbf16, #tpu.memory_space<vmem>>, %arg4: memref<1x32xbf16, #tpu.memory_space<vmem>>, %arg5: memref<1x32xbf16, #tpu.memory_space<vmem>>, %arg6: memref<1x1xf32, #tpu.memory_space<vmem>>, %arg7: memref<1x1x1024xf32, #tpu.memory_space<vmem>>) attributes {dimension_semantics = [#tpu.dimension_semantics<parallel>], iteration_bounds = array<i64: 2>, scalar_prefetch = 0 : i64, scratch_operands = 0 : i64, tpu.core_type = #tpu.core_type<tc>, window_params = [{transform_indices = @transform_0, window_bounds = array<i64: 1024, 66>}, {pipeline_mode = #tpu.pipeline_mode<synchronous>, transform_indices = @transform_1, window_bounds = array<i64: 66, 128>}, {pipeline_mode = #tpu.pipeline_mode<synchronous>, transform_indices = @transform_2, window_bounds = array<i64: 128, 32>}, {pipeline_mode = #tpu.pipeline_mode<synchronous>, transform_indices = @transform_3, window_bounds = array<i64: 1, 32>}, {pipeline_mode = #tpu.pipeline_mode<synchronous>, transform_indices = @transform_4, window_bounds = array<i64: 1, 32>}, {pipeline_mode = #tpu.pipeline_mode<synchronous>, transform_indices = @transform_5, window_bounds = array<i64: 1, 1>}, {transform_indices = @transform_6, window_bounds = array<i64: 1, 1, 1024>}]} {
    %c0 = arith.constant 0 : index
    %c0_0 = arith.constant 0 : index
    %0 = vector.load %arg1[%c0, %c0_0] : memref<1024x66xbf16, #tpu.memory_space<vmem>>, vector<1024x66xbf16>
    %c0_1 = arith.constant 0 : index
    %c0_2 = arith.constant 0 : index
    %1 = vector.load %arg2[%c0_1, %c0_2] : memref<66x128xbf16, #tpu.memory_space<vmem>>, vector<66x128xbf16>
    %cst = arith.constant dense<0.000000e+00> : vector<1024x128xf32>
    %2 = tpu.matmul %0, %1, %cst {dimension_numbers = #tpu.dot_dimension_numbers<[1], [0], [0], [1], [0, 0, 1, 1], [], []>} : vector<1024x66xbf16>, vector<66x128xbf16>, vector<1024x128xf32> -> vector<1024x128xf32>
    %3 = arith.truncf %2 : vector<1024x128xf32> to vector<1024x128xbf16>
    %cst_3 = arith.constant 0.000000e+00 : bf16
    %4 = vector.broadcast %cst_3 : bf16 to vector<1024x128xbf16>
    %5 = arith.maximumf %3, %4 : vector<1024x128xbf16>
    %c0_4 = arith.constant 0 : index
    %c0_5 = arith.constant 0 : index
    %6 = vector.load %arg3[%c0_4, %c0_5] : memref<128x32xbf16, #tpu.memory_space<vmem>>, vector<128x32xbf16>
    %cst_6 = arith.constant dense<0.000000e+00> : vector<1024x32xf32>
    %7 = tpu.matmul %5, %6, %cst_6 {dimension_numbers = #tpu.dot_dimension_numbers<[1], [0], [0], [1], [0, 0, 1, 1], [], []>} : vector<1024x128xbf16>, vector<128x32xbf16>, vector<1024x32xf32> -> vector<1024x32xf32>
    %8 = arith.truncf %7 : vector<1024x32xf32> to vector<1024x32xbf16>
    %c0_7 = arith.constant 0 : index
    %c0_8 = arith.constant 0 : index
    %9 = vector.load %arg4[%c0_7, %c0_8] : memref<1x32xbf16, #tpu.memory_space<vmem>>, vector<1x32xbf16>
    %10 = vector.broadcast %9 : vector<1x32xbf16> to vector<1024x32xbf16>
    %11 = arith.addf %8, %10 : vector<1024x32xbf16>
    %cst_9 = arith.constant 0.000000e+00 : bf16
    %12 = vector.broadcast %cst_9 : bf16 to vector<1024x32xbf16>
    %13 = arith.maximumf %11, %12 : vector<1024x32xbf16>
    %c0_10 = arith.constant 0 : index
    %c0_11 = arith.constant 0 : index
    %14 = vector.load %arg5[%c0_10, %c0_11] : memref<1x32xbf16, #tpu.memory_space<vmem>>, vector<1x32xbf16>
    %cst_12 = arith.constant dense<0.000000e+00> : vector<1x1024xf32>
    %15 = tpu.matmul %14, %13, %cst_12 {dimension_numbers = #tpu.dot_dimension_numbers<[1], [1], [0], [0], [0, 0, 1, 0], [], []>} : vector<1x32xbf16>, vector<1024x32xbf16>, vector<1x1024xf32> -> vector<1x1024xf32>
    %c0_13 = arith.constant 0 : index
    %c0_14 = arith.constant 0 : index
    %16 = vector.load %arg6[%c0_13, %c0_14] : memref<1x1xf32, #tpu.memory_space<vmem>>, vector<1x1xf32>
    %17 = vector.broadcast %16 : vector<1x1xf32> to vector<1x1024xf32>
    %18 = arith.addf %15, %17 : vector<1x1024xf32>
    %19 = arith.negf %18 : vector<1x1024xf32>
    %20 = math.exp %19 : vector<1x1024xf32>
    %cst_15 = arith.constant 1.000000e+00 : f32
    %21 = vector.broadcast %cst_15 : f32 to vector<1x1024xf32>
    %22 = arith.addf %21, %20 : vector<1x1024xf32>
    %23 = arith.divf %21, %22 : vector<1x1024xf32>
    %24 = vector.shape_cast %23 : vector<1x1024xf32> to vector<1x1x1024xf32>
    %c0_16 = arith.constant 0 : index
    %c0_17 = arith.constant 0 : index
    %c0_18 = arith.constant 0 : index
    %25 = vector.load %arg7[%c0_16, %c0_17, %c0_18] : memref<1x1x1024xf32, #tpu.memory_space<vmem>>, vector<1x1x1024xf32>
    tpu.vector_store %arg7[%c0_16, %c0_17, %c0_18], %24 {strides = array<i32>} : memref<1x1x1024xf32, #tpu.memory_space<vmem>>, vector<1x1x1024xf32>,
    return
  }
  func.func @transform_0(%arg0: i32) -> (i32, i32) {
    %c0_i32 = arith.constant 0 : i32
    %c0_i32_0 = arith.constant 0 : i32
    return %arg0, %c0_i32 : i32, i32
  }
  func.func @transform_1(%arg0: i32) -> (i32, i32) {
    %c0_i32 = arith.constant 0 : i32
    %c0_i32_0 = arith.constant 0 : i32
    %c0_i32_1 = arith.constant 0 : i32
    return %c0_i32, %c0_i32_0 : i32, i32
  }
  func.func @transform_2(%arg0: i32) -> (i32, i32) {
    %c0_i32 = arith.constant 0 : i32
    %c0_i32_0 = arith.constant 0 : i32
    %c0_i32_1 = arith.constant 0 : i32
    return %c0_i32, %c0_i32_0 : i32, i32
  }
  func.func @transform_3(%arg0: i32) -> (i32, i32) {
    %c0_i32 = arith.constant 0 : i32
    %c0_i32_0 = arith.constant 0 : i32
    %c0_i32_1 = arith.constant 0 : i32
    return %c0_i32, %c0_i32_0 : i32, i32
  }
  func.func @transform_4(%arg0: i32) -> (i32, i32) {
    %c0_i32 = arith.constant 0 : i32
    %c0_i32_0 = arith.constant 0 : i32
    %c0_i32_1 = arith.constant 0 : i32
    return %c0_i32, %c0_i32_0 : i32, i32
  }
  func.func @transform_5(%arg0: i32) -> (i32, i32) {
    %c0_i32 = arith.constant 0 : i32
    %c0_i32_0 = arith.constant 0 : i32
    %c0_i32_1 = arith.constant 0 : i32
    return %c0_i32, %c0_i32_0 : i32, i32
  }
  func.func @transform_6(%arg0: i32) -> (i32, i32, i32) {
    %c0_i32 = arith.constant 0 : i32
    %c0_i32_0 = arith.constant 0 : i32
    %c0_i32_1 = arith.constant 0 : i32
    return %arg0, %c0_i32, %c0_i32_0 : i32, i32, i32
  }
}

</mosaic_0001>

<bundles_post_ra>
// kernel: tpu_custom_call.1
= control target key start
LH: loop header
LB: loop body
LE: loop exit
PB: predicated region body
PF: predicated region fallthrough
CT: control target
= control target key end

     0   :  { %s4723_s0 = inlined_call_operand.vmem [shape: bf16[2048,66], index: 0, kind: input, shape index: {}]   ;;  %s4724_s1 = inlined_call_operand.vmem [shape: bf16[66,128], index: 1, kind: input, shape index: {}]   ;;  %s4725_s2 = inlined_call_operand.vmem [shape: bf16[128,32], index: 2, kind: input, shape index: {}]   ;;  %s4726_s3 = inlined_call_operand.vmem [shape: bf16[1,32], index: 3, kind: input, shape index: {}]   ;;  %s4727_s4 = inlined_call_operand.vmem [shape: bf16[1,32], index: 4, kind: input, shape index: {}]   ;;  %s4728_s5 = inlined_call_operand.<no memory space> [shape: f32[1,1], index: 5, kind: input, shape index: {}]   ;;  %s4729_s6 = inlined_call_operand.hbm [shape: f32[2,1,1024], index: 6, kind: output, shape index: {}]  }
   0x1   :  { %v11_v0 = vstv %s4728_s5 }
   0x2   :  { %12 = vst [vmem:[#allocation2] sm:$0x1] %v11_v0 }
   0x3   :  { %13 = vsyncpa [#allocation4], 0 }
   0x4   :  { %15 = vsyncpa [#allocation4 + $0x1], 0  ;;  %s3920_s23 = smov 0   ;;  %s3922_s24 = smov 0  }
   0x5   :  { %s3924_s25 = smov 0   ;;  %s3926_s26 = smov 0  }
   0x6 LB: > { %s2969_s5 = sadd.s32 4294967295, %s3877_s26   ;;  %s2970_s27 = sadd.s32 4294967294, %s3877_s26   ;;  %s3877_s26 = sphi %s3926_s26, %s4735_s26   ;;  %s3873_s25 = sphi %s3924_s25, %s4734_s25   ;;  %s3869_s24 = sphi %s3922_s24, %s4733_s24   ;;  %s3865_s23 = sphi %s3920_s23, %s4732_s23  }
   0x7   : > { %s3943_s28 = sadd.s32 1, %s3877_s26   ;;  %s159_s29 = sadd.s32 1, %s3873_s25 }
   0x8   : > { %s156_s30 = ssub.s32 %s3877_s26, %s3943_s28  ;;  %p169_p0 = scmp.ne.s32.totalorder %s3873_s25, %s3869_s24 }
   0x9   : > { %p157_p1 = scmp.eq.s32.totalorder %s156_s30, 0  ;;  %p170_p2 = scmp.eq.s32.totalorder %s2969_s5, 1 }
   0xa   : > { %p175_p3 = scmp.ne.s32.totalorder %s3869_s24, %s3865_s23  ;;  %p176_p4 = scmp.eq.s32.totalorder %s2970_s27, 1 }
   0xb   : > { %s3953_s7 = scalar_select %p157_p1, %s3873_s25, %s159_s29  }
   0xc   : > { %p3955_p5 = por %p170_p2, %p169_p0  ;;  %p3959_p6 = por %p176_p4, %p175_p3 }
   0xd   : > { %p2973_p7 = scmp.ge.s32.totalorder %s3877_s26, 1  ;;  %p218_p8 = scmp.lt.s32.totalorder %s3877_s26, 3 }
   0xf   : > { %p219_p9 = pnand %p2973_p7, %p218_p8 }
  0x10   : > { %v3706_v1 = vld [vmem:[%s4724_s1] sm:$0xff] (!%p219_p9)   ;;  %v3707_v2 = vld [vmem:[%s4724_s1 + $0x8] sm:$0xff] (!%p219_p9)   ;;  %s3971_s14 = sshll.u32 (!%p219_p9), %s2969_s5, 7  ;;  %v3708_v3 = vld [vmem:[%s4724_s1 + $0x10] sm:$0xff] (!%p219_p9)   ;;  %vm739_vm0 = vcmask (!%p219_p9), 539648   ;;  %vm932_vm1 = vcmask (!%p219_p9), 1040384  }
  0x11   : > { %222 = sbr.rel (%p219_p9) target bundleno = 1031 (0x407), region = 44  ;;  %3349 = vmatprep.subr.bf16.mxu0 (!%p219_p9), %v3706_v1  ;;  %p249_p10 = scmp.lt.s32.totalorder (!%p219_p9), %s3971_s14, 255  ;;  %v3709_v4 = vld [vmem:[%s4724_s1 + $0x18] sm:$0xff] (!%p219_p9)   ;;  %v3710_v6 = vld [vmem:[%s4724_s1 + $0x20] ss:$0 sps:$4 sm:$0x11] (!%p219_p9)  }
  0x12   : > { %3350 = vmatpush3.bf16.msra.mxu0 (!%p219_p9), %v3706_v1  ;;  %v934_v7 = vsel (!%p219_p9), %vm932_vm1, %v3710_v6, 0  ;;  %v3745_v15 = vld [vmem:[%s4725_s2] sm:$0xff] (!%p219_p9)   ;;  %v3747_v17 = vld [vmem:[%s4725_s2 + $0x8] sm:$0xff] (!%p219_p9)   ;;  %v3749_v18 = vld [vmem:[%s4725_s2 + $0x10] sm:$0xff] (!%p219_p9)   ;;  %v3879_v40 = vmov (!%p219_p9), 0   ;;  %vm2429_vm2 = vcmask (!%p219_p9), 261120  }
  0x13   : > { %3351 = vmatprep.subr.bf16.mxu0 (!%p219_p9), %v3707_v2  ;;  %3487 = vmatprep.subr.bf16.mxu1 (!%p219_p9), %v3745_v15  ;;  %v3751_v20 = vld [vmem:[%s4725_s2 + $0x18] sm:$0xff] (!%p219_p9)   ;;  %v3753_v22 = vld [vmem:[%s4725_s2 + $0x20] sm:$0xff] (!%p219_p9)   ;;  %v3755_v24 = vld [vmem:[%s4725_s2 + $0x28] sm:$0xff] (!%p219_p9)   ;;  %s245_s13 = sand.u32 (!%p219_p9), 1, %s3869_s24   ;;  %s3881_s27 = smov (!%p219_p9), [#allocation3]  }
  0x14   : > { %3488 = vmatpush3.bf16.msra.mxu1 (!%p219_p9), %v3745_v15  ;;  %v3757_v36 = vld [vmem:[%s4725_s2 + $0x30] sm:$0xff] (!%p219_p9)   ;;  %v3759_v39 = vld [vmem:[%s4725_s2 + $0x38] sm:$0xff] (!%p219_p9)   ;;  %3705 = vset.pattern.permute.xlu0 (!%p219_p9), %v3879_v40  ;;  %s2974_s15 = sshll.u32 (!%p219_p9), %s245_s13, 3  ;;  %s2897_s21 = scalar_lea.sflag (!%p219_p9), [#allocation4], %s245_s13 }
  0x15   : > { %3489 = vmatprep.subr.bf16.mxu1 (!%p219_p9), %v3747_v17  ;;  %s247_s16 = scalar_lea.vmem (!%p219_p9), [#allocation3], %s2974_s15  ;;  %s3819_s29 = sshll.u32 (!%p219_p9), %s3881_s27, 4  ;;  %s3820_s29 = int_to_ptr.vmem [resolvable:$false] %s3819_s29 }
  0x16   : > { %3352 = vmatpush3.bf16.msra.mxu0 (!%p219_p9), %v3707_v2  ;;  %s3821_s30 = scalar_lea.vmem (!%p219_p9), %s3820_s29, 256 }
  0x17   : > { %3353 = vmatprep.subr.bf16.mxu0 (!%p219_p9), %v3708_v3 }
  0x18   : > { %s250_s17 = scalar_select %p249_p10, %s3971_s14, 255  ;;  %3490 = vmatpush3.bf16.msra.mxu1 %v3747_v17 }
  0x19   : > { %3491 = vmatprep.subr.bf16.mxu1 %v3749_v18 }
  0x1a   : > { %s2976_s20 = sshll.u32 %s250_s17, 2  ;;  %3354 = vmatpush3.bf16.msra.mxu0 %v3708_v3  ;;  %s2911_s17 = sshll.u32 %s247_s16, 4  ;;  %s4683_s17 = int_to_ptr.vmem [resolvable:$true] %s2911_s17 }
  0x1b   : > { %s3984_s5 = scalar_lea.vmem %s4723_s0, %s2976_s20  ;;  %3355 = vmatprep.subr.bf16.mxu0 %v3709_v4  ;;  %s4681_s20 = scalar_lea.hbm %s4729_s6, %s3971_s14 }
  0x1c   : > { %v3711_v5 = vld [vmem:[%s3984_s5] sm:$0xff]   ;;  %v3712_v8 = vld [vmem:[%s3984_s5 + $0x8] sm:$0xff]   ;;  %v3713_v9 = vld [vmem:[%s3984_s5 + $0x10] sm:$0xff]   ;;  %3492 = vmatpush3.bf16.msra.mxu1 %v3749_v18  ;;  %s3815_s22 = scalar_lea.vmem %s4683_s17, 128  ;;  %p3822_p0 = scmp.lt.s32.totalorder %s4683_s17, %s3820_s29 }
  0x1d   : > { %3359 = vmatprep.mubr.msk.bf16.mxu0 %vm739_vm0, %v3711_v5  ;;  %v3714_v10 = vld [vmem:[%s3984_s5 + $0x18] sm:$0xff]   ;;  %v3715_v11 = vld [vmem:[%s3984_s5 + $0x20] sm:$0xff]   ;;  %v3716_v12 = vld [vmem:[%s3984_s5 + $0x28] sm:$0xff]   ;;  %3493 = vmatprep.subr.bf16.mxu1 %v3751_v20  ;;  %p3816_p11 = scmp.ne.s32.totalorder %s4683_s17, %s3815_s22  ;;  %p3823_p1 = scmp.lt.s32.totalorder %s3821_s30, %s3815_s22 }
  0x1e   : > { %3356 = vmatpush3.bf16.msra.mxu0 %v3709_v4  ;;  %v3717_v13 = vld [vmem:[%s3984_s5 + $0x30] sm:$0xff]   ;;  %v3718_v14 = vld [vmem:[%s3984_s5 + $0x38] sm:$0xff]   ;;  %v3719_v16 = vld [vmem:[%s3984_s5 + $0x40] sm:$0xff]  }
  0x1f   : > { %3631 = vmatprep.subr.msk.bf16.mxu0 %vm932_vm1, %v3710_v6  ;;  %v3720_v19 = vld [vmem:[%s3984_s5 + $0x48] sm:$0xff]   ;;  %v3721_v21 = vld [vmem:[%s3984_s5 + $0x50] sm:$0xff]   ;;  %v3722_v23 = vld [vmem:[%s3984_s5 + $0x58] sm:$0xff]   ;;  %p3817_p12 = pnand %p3816_p11, %p3955_p5  ;;  %p3824_p2 = por %p3823_p1, %p3822_p0 }
  0x20   : > { %3494 = vmatpush3.bf16.msra.mxu1 %v3751_v20  ;;  %v3723_v25 = vld [vmem:[%s3984_s5 + $0x60] sm:$0xff]   ;;  %v3724_v26 = vld [vmem:[%s3984_s5 + $0x68] sm:$0xff]   ;;  %v3725_v27 = vld [vmem:[%s3984_s5 + $0x70] sm:$0xff]  }
  0x21   : > { %3495 = vmatprep.subr.bf16.mxu1 %v3753_v22  ;;  %v3726_v28 = vld [vmem:[%s3984_s5 + $0x78] sm:$0xff]   ;;  %v3727_v29 = vld [vmem:[%s3984_s5 + $0x80] sm:$0xff]   ;;  %v3728_v30 = vld [vmem:[%s3984_s5 + $0x88] sm:$0xff]   ;;  %p3818_p13 = pneg %p3817_p12 }
  0x22   : > { %3358 = vmatpush3.bf16.msra.mxu0 %v934_v7  ;;  %v3729_v31 = vld [vmem:[%s3984_s5 + $0x90] sm:$0xff]   ;;  %v3730_v32 = vld [vmem:[%s3984_s5 + $0x98] sm:$0xff]   ;;  %v3731_v33 = vld [vmem:[%s3984_s5 + $0xa0] sm:$0xff]  }
  0x23   : > { %v3732_v34 = vld [vmem:[%s3984_s5 + $0xa8] sm:$0xff]   ;;  %v3733_v35 = vld [vmem:[%s3984_s5 + $0xb0] sm:$0xff]   ;;  %v3734_v37 = vld [vmem:[%s3984_s5 + $0xb8] sm:$0xff]   ;;  %p3825_p3 = pnand %p3824_p2, %p3818_p13 }
  0x24   : > { %3496 = vmatpush3.bf16.msra.mxu1 %v3753_v22  ;;  %v3735_v38 = vld [vmem:[%s3984_s5 + $0xc0] sm:$0xff]   ;;  %v3736_v41 = vld [vmem:[%s3984_s5 + $0xc8] sm:$0xff]   ;;  %v3737_v42 = vld [vmem:[%s3984_s5 + $0xd0] sm:$0xff]  }
  0x25   : > { %3360 = vmatmul.mubr.msk.bf16.vlgmr.msra.gmra.mrb[0].mxu0 %vm739_vm0, %v3712_v8  ;;  %3497 = vmatprep.subr.bf16.mxu1 %v3755_v24  ;;  %v3738_v43 = vld [vmem:[%s3984_s5 + $0xd8] sm:$0xff]   ;;  %v3739_v44 = vld [vmem:[%s3984_s5 + $0xe0] sm:$0xff]   ;;  %v3740_v45 = vld [vmem:[%s3984_s5 + $0xe8] sm:$0xff]  }
  0x26   : > { %3363 = vmatprep.mubr.msk.bf16.mxu0 %vm739_vm0, %v3713_v9  ;;  %v3741_v46 = vld [vmem:[%s3984_s5 + $0xf0] sm:$0xff]   ;;  %v3742_v47 = vld [vmem:[%s3984_s5 + $0xf8] sm:$0xff]   ;;  %v3743_v48 = vld [vmem:[%s3984_s5 + $0x100] sm:$0xff]  }
  0x27   : > { %v3744_v49 = vld [vmem:[%s3984_s5 + $0x108] sm:$0xff]   ;;  %v3746_v50 = vld [vmem:[%s3984_s5 + $0x110] sm:$0xff]   ;;  %v3748_v51 = vld [vmem:[%s3984_s5 + $0x118] sm:$0xff]  }
  0x28   : > { %3498 = vmatpush3.bf16.msra.mxu1 %v3755_v24  ;;  %v3750_v52 = vld [vmem:[%s3984_s5 + $0x120] sm:$0xff]   ;;  %v3752_v53 = vld [vmem:[%s3984_s5 + $0x128] sm:$0xff]   ;;  %v3754_v54 = vld [vmem:[%s3984_s5 + $0x130] sm:$0xff]  }
  0x29   : > { %3499 = vmatprep.subr.bf16.mxu1 %v3757_v36  ;;  %v3756_v55 = vld [vmem:[%s3984_s5 + $0x138] sm:$0xff]   ;;  %v3758_v56 = vld [vmem:[%s3984_s5 + $0x140] sm:$0xff]   ;;  %v3760_v57 = vld [vmem:[%s3984_s5 + $0x148] sm:$0xff]  }
  0x2a   : > { %v3761_v58 = vld [vmem:[%s3984_s5 + $0x150] sm:$0xff]   ;;  %v3762_v59 = vld [vmem:[%s3984_s5 + $0x158] sm:$0xff]   ;;  %v3763_v60 = vld [vmem:[%s3984_s5 + $0x160] sm:$0xff]  }
  0x2b   : > { %v3764_v61 = vld [vmem:[%s3984_s5 + $0x168] sm:$0xff]   ;;  %v3765_v62 = vld [vmem:[%s3984_s5 + $0x170] sm:$0xff]   ;;  %v3766_v63 = vld [vmem:[%s3984_s5 + $0x178] sm:$0xff]  }
  0x2c   : > { %3500 = vmatpush3.bf16.msra.mxu1 %v3757_v36  ;;  %v3767_v0 = vld [vmem:[%s3984_s5 + $0x180] sm:$0xff]   ;;  %v3768_v1 = vld [vmem:[%s3984_s5 + $0x188] sm:$0xff]   ;;  %v3769_v2 = vld [vmem:[%s3984_s5 + $0x190] sm:$0xff]  }
  0x2d   : > { %3364 = vmatmul.mubr.msk.bf16.gmra.mrb[4].mxu0 %vm739_vm0, %v3714_v10  ;;  %3501 = vmatprep.subr.bf16.mxu1 %v3759_v39  ;;  %v3770_v3 = vld [vmem:[%s3984_s5 + $0x198] sm:$0xff]   ;;  %v3771_v4 = vld [vmem:[%s3984_s5 + $0x1a0] sm:$0xff]   ;;  %v3772_v5 = vld [vmem:[%s3984_s5 + $0x1a8] sm:$0xff]  }
  0x2e   : > { %3367 = vmatprep.mubr.msk.bf16.mxu0 %vm739_vm0, %v3715_v11  ;;  %v3773_v6 = vld [vmem:[%s3984_s5 + $0x1b0] sm:$0xff]   ;;  %v3774_v9 = vld [vmem:[%s3984_s5 + $0x1b8] sm:$0xff]   ;;  %v3775_v11 = vld [vmem:[%s3984_s5 + $0x1c0] sm:$0xff]  }
  0x30   : > { %3502 = vmatpush3.bf16.msra.mxu1 %v3759_v39  ;;  %v3780_v39 = vld [vmem:[%s3984_s5 + $0x1e8] sm:$0xff]  }
  0x35   : > { %3368 = vmatmul.mubr.msk.bf16.gmra.mrb[8].mxu0 %vm739_vm0, %v3716_v12 }
  0x36   : > { %3371 = vmatprep.mubr.msk.bf16.mxu0 %vm739_vm0, %v3717_v13 }
  0x3d   : > { %3372 = vmatmul.mubr.msk.bf16.gmra.mrb[12].mxu0 %vm739_vm0, %v3718_v14 }
  0x3e   : > { %3375 = vmatprep.mubr.msk.bf16.mxu0 %vm739_vm0, %v3719_v16 }
  0x45   : > { %3376 = vmatmul.mubr.msk.bf16.gmra.mrb[16].mxu0 %vm739_vm0, %v3720_v19  ;;  %v3776_v19 = vld [vmem:[%s3984_s5 + $0x1c8] sm:$0xff]  }
  0x46   : > { %3379 = vmatprep.mubr.msk.bf16.mxu0 %vm739_vm0, %v3721_v21  ;;  %v3777_v21 = vld [vmem:[%s3984_s5 + $0x1d0] sm:$0xff]  }
  0x4d   : > { %3380 = vmatmul.mubr.msk.bf16.gmra.mrb[20].mxu0 %vm739_vm0, %v3722_v23 }
  0x4e   : > { %3383 = vmatprep.mubr.msk.bf16.mxu0 %vm739_vm0, %v3723_v25 }
  0x55   : > { %3384 = vmatmul.mubr.msk.bf16.gmra.mrb[24].mxu0 %vm739_vm0, %v3724_v26 }
  0x56   : > { %3387 = vmatprep.mubr.msk.bf16.mxu0 %vm739_vm0, %v3725_v27 }
  0x5d   : > { %3388 = vmatmul.mubr.msk.bf16.gmra.mrb[28].mxu0 %vm739_vm0, %v3726_v28 }
  0x5e   : > { %3391 = vmatprep.mubr.msk.bf16.mxu0 %vm739_vm0, %v3727_v29  ;;  %v3778_v29 = vld [vmem:[%s3984_s5 + $0x1d8] sm:$0xff]  }
  0x65   : > { %3392 = vmatmul.mubr.msk.bf16.gmra.mrb[32].mxu0 %vm739_vm0, %v3728_v30 }
  0x66   : > { %3395 = vmatprep.mubr.msk.bf16.mxu0 %vm739_vm0, %v3729_v31  ;;  %v3779_v31 = vld [vmem:[%s3984_s5 + $0x1e0] sm:$0xff]  }
  0x6d   : > { %3396 = vmatmul.mubr.msk.bf16.gmra.mrb[36].mxu0 %vm739_vm0, %v3730_v32 }
  0x6e   : > { %3399 = vmatprep.mubr.msk.bf16.mxu0 %vm739_vm0, %v3731_v33 }
  0x75   : > { %3400 = vmatmul.mubr.msk.bf16.gmra.mrb[40].mxu0 %vm739_vm0, %v3732_v34 }
  0x76   : > { %3403 = vmatprep.mubr.msk.bf16.mxu0 %vm739_vm0, %v3733_v35 }
  0x7d   : > { %3404 = vmatmul.mubr.msk.bf16.gmra.mrb[44].mxu0 %vm739_vm0, %v3734_v37 }
  0x7e   : > { %3407 = vmatprep.mubr.msk.bf16.mxu0 %vm739_vm0, %v3735_v38 }
  0x85   : > { %3408 = vmatmul.mubr.msk.bf16.gmra.mrb[48].mxu0 %vm739_vm0, %v3736_v41 }
  0x86   : > { %3411 = vmatprep.mubr.msk.bf16.mxu0 %vm739_vm0, %v3737_v42  ;;  %v3781_v42 = vld [vmem:[%s3984_s5 + $0x1f0] sm:$0xff]  }
  0x8d   : > { %3412 = vmatmul.mubr.msk.bf16.gmra.mrb[52].mxu0 %vm739_vm0, %v3738_v43 }
  0x8e   : > { %3415 = vmatprep.mubr.msk.bf16.mxu0 %vm739_vm0, %v3739_v44 }
  0x95   : > { %3416 = vmatmul.mubr.msk.bf16.gmra.mrb[56].mxu0 %vm739_vm0, %v3740_v45 }
  0x96   : > { %3419 = vmatprep.mubr.msk.bf16.mxu0 %vm739_vm0, %v3741_v46 }
  0x9d   : > { %3420 = vmatmul.mubr.msk.bf16.gmra.mrb[60].mxu0 %vm739_vm0, %v3742_v47 }
  0x9e   : > { %3423 = vmatprep.mubr.msk.bf16.mxu0 %vm739_vm0, %v3743_v48 }
  0xa5   : > { %3424 = vmatmul.mubr.msk.bf16.gmra.mrb[64].mxu0 %vm739_vm0, %v3744_v49 }
  0xa6   : > { %3427 = vmatprep.mubr.msk.bf16.mxu0 %vm739_vm0, %v3746_v50  ;;  %v3782_v50 = vld [vmem:[%s3984_s5 + $0x1f8] sm:$0xff]  }
  0xad   : > { %3428 = vmatmul.mubr.msk.bf16.gmra.mrb[68].mxu0 %vm739_vm0, %v3748_v51 }
  0xae   : > { %3431 = vmatprep.mubr.msk.bf16.mxu0 %vm739_vm0, %v3750_v52 }
  0xb5   : > { %3432 = vmatmul.mubr.msk.bf16.gmra.mrb[72].mxu0 %vm739_vm0, %v3752_v53 }
  0xb6   : > { %3435 = vmatprep.mubr.msk.bf16.mxu0 %vm739_vm0, %v3754_v54 }
  0xbd   : > { %3436 = vmatmul.mubr.msk.bf16.gmra.mrb[76].mxu0 %vm739_vm0, %v3756_v55 }
  0xbe   : > { %3439 = vmatprep.mubr.msk.bf16.mxu0 %vm739_vm0, %v3758_v56 }
  0xc5   : > { %3440 = vmatmul.mubr.msk.bf16.gmra.mrb[80].mxu0 %vm739_vm0, %v3760_v57 }
  0xc6   : > { %3443 = vmatprep.mubr.msk.bf16.mxu0 %vm739_vm0, %v3761_v58 }
  0xcd   : > { %3444 = vmatmul.mubr.msk.bf16.gmra.mrb[84].mxu0 %vm739_vm0, %v3762_v59 }
  0xce   : > { %3447 = vmatprep.mubr.msk.bf16.mxu0 %vm739_vm0, %v3763_v60 }
  0xd5   : > { %3448 = vmatmul.mubr.msk.bf16.gmra.mrb[88].mxu0 %vm739_vm0, %v3764_v61 }
  0xd6   : > { %3451 = vmatprep.mubr.msk.bf16.mxu0 %vm739_vm0, %v3765_v62 }
  0xdd   : > { %3452 = vmatmul.mubr.msk.bf16.gmra.mrb[92].mxu0 %vm739_vm0, %v3766_v63 }
  0xde   : > { %3455 = vmatprep.mubr.msk.bf16.mxu0 %vm739_vm0, %v3767_v0 }
  0xe5   : > { %3456 = vmatmul.mubr.msk.bf16.gmra.mrb[96].mxu0 %vm739_vm0, %v3768_v1 }
  0xe6   : > { %3459 = vmatprep.mubr.msk.bf16.mxu0 %vm739_vm0, %v3769_v2 }
  0xed   : > { %3460 = vmatmul.mubr.msk.bf16.gmra.mrb[100].mxu0 %vm739_vm0, %v3770_v3 }
  0xee   : > { %3463 = vmatprep.mubr.msk.bf16.mxu0 %vm739_vm0, %v3771_v4 }
  0xf5   : > { %3464 = vmatmul.mubr.msk.bf16.gmra.mrb[104].mxu0 %vm739_vm0, %v3772_v5 }
  0xf6   : > { %3467 = vmatprep.mubr.msk.bf16.mxu0 %vm739_vm0, %v3773_v6 }
  0xf8   : > { %v3361_v7 = vpop.f32.mrb[0].mxu0 }
  0xf9   : > { %v970_v8 = vpop.f32.mrb[1].mxu0 }
  0xfa   : > { %v3362_v10 = vpop.f32.mrb[2].mxu0 }
  0xfb   : > { %v1482_v12 = vpack.c.bf16 %v3362_v10, %v3361_v7  ;;  %v973_v13 = vpop.f32.mrb[3].mxu0 }
  0xfc   : > { %v1481_v14 = vpack.c.bf16 %v973_v13, %v970_v8 }
  0xfd   : > { %3468 = vmatmul.mubr.msk.bf16.gmra.mrb[108].mxu0 %vm739_vm0, %v3774_v9  ;;  %v1546_v16 = vmax.bf16 %v3879_v40, %v1482_v12 }
  0xfe   : > { %v1545_v15 = vmax.bf16 %v3879_v40, %v1481_v14  ;;  %3471 = vmatprep.mubr.msk.bf16.mxu0 %vm739_vm0, %v3775_v11 }
 0x100   : > { %v3365_v17 = vpop.f32.mrb[4].mxu0  ;;  %3503 = vmatprep.mubr.bf16.mxu1 %v1545_v15 }
 0x101   : > { %v986_v18 = vpop.f32.mrb[5].mxu0  ;;  %3504 = vmatmul.mubr.bf16.vlgmr.msra.gmra.mrb[0].mxu1 %v1546_v16 }
 0x102   : > { %v3366_v20 = vpop.f32.mrb[6].mxu0 }
 0x103   : > { %v1484_v22 = vpack.c.bf16 %v3366_v20, %v3365_v17  ;;  %v989_v23 = vpop.f32.mrb[7].mxu0 }
 0x104   : > { %v1483_v24 = vpack.c.bf16 %v989_v23, %v986_v18 }
 0x105   : > { %3472 = vmatmul.mubr.msk.bf16.gmra.mrb[112].mxu0 %vm739_vm0, %v3776_v19  ;;  %v1548_v26 = vmax.bf16 %v3879_v40, %v1484_v22 }
 0x106   : > { %v1547_v25 = vmax.bf16 %v3879_v40, %v1483_v24  ;;  %3475 = vmatprep.mubr.msk.bf16.mxu0 %vm739_vm0, %v3777_v21 }
 0x108   : > { %v3369_v27 = vpop.f32.mrb[8].mxu0  ;;  %3507 = vmatprep.mubr.bf16.mxu1 %v1547_v25 }
 0x109   : > { %v1002_v28 = vpop.f32.mrb[9].mxu0  ;;  %3508 = vmatmul.mubr.bf16.gmra.mrb[4].mxu1 %v1548_v26 }
 0x10a   : > { %v3370_v30 = vpop.f32.mrb[10].mxu0 }
 0x10b   : > { %v1486_v32 = vpack.c.bf16 %v3370_v30, %v3369_v27  ;;  %v1005_v33 = vpop.f32.mrb[11].mxu0 }
 0x10c   : > { %v1485_v34 = vpack.c.bf16 %v1005_v33, %v1002_v28 }
 0x10d   : > { %3476 = vmatmul.mubr.msk.bf16.gmra.mrb[116].mxu0 %vm739_vm0, %v3778_v29  ;;  %v1550_v36 = vmax.bf16 %v3879_v40, %v1486_v32 }
 0x10e   : > { %v1549_v35 = vmax.bf16 %v3879_v40, %v1485_v34  ;;  %3479 = vmatprep.mubr.msk.bf16.mxu0 %vm739_vm0, %v3779_v31 }
 0x110   : > { %v3373_v37 = vpop.f32.mrb[12].mxu0  ;;  %3511 = vmatprep.mubr.bf16.mxu1 %v1549_v35 }
 0x111   : > { %v1018_v38 = vpop.f32.mrb[13].mxu0  ;;  %3512 = vmatmul.mubr.bf16.gmra.mrb[8].mxu1 %v1550_v36 }
 0x112   : > { %v3374_v41 = vpop.f32.mrb[14].mxu0 }
 0x113   : > { %v1488_v43 = vpack.c.bf16 %v3374_v41, %v3373_v37  ;;  %v1021_v44 = vpop.f32.mrb[15].mxu0 }
 0x114   : > { %v1487_v45 = vpack.c.bf16 %v1021_v44, %v1018_v38 }
 0x115   : > { %3480 = vmatmul.mubr.msk.bf16.gmra.mrb[120].mxu0 %vm739_vm0, %v3780_v39  ;;  %v1552_v47 = vmax.bf16 %v3879_v40, %v1488_v43 }
 0x116   : > { %v1551_v46 = vmax.bf16 %v3879_v40, %v1487_v45  ;;  %3483 = vmatprep.mubr.msk.bf16.mxu0 %vm739_vm0, %v3781_v42 }
 0x118   : > { %v3377_v48 = vpop.f32.mrb[16].mxu0  ;;  %3515 = vmatprep.mubr.bf16.mxu1 %v1551_v46 }
 0x119   : > { %v1034_v49 = vpop.f32.mrb[17].mxu0  ;;  %3516 = vmatmul.mubr.bf16.gmra.mrb[12].mxu1 %v1552_v47 }
 0x11a   : > { %v3378_v51 = vpop.f32.mrb[18].mxu0 }
 0x11b   : > { %v1490_v52 = vpack.c.bf16 %v3378_v51, %v3377_v48  ;;  %v1037_v53 = vpop.f32.mrb[19].mxu0 }
 0x11c   : > { %v1489_v54 = vpack.c.bf16 %v1037_v53, %v1034_v49 }
 0x11d   : > { %3484 = vmatmul.mubr.msk.bf16.gmra.mrb[124].mxu0 %vm739_vm0, %v3782_v50  ;;  %v1554_v56 = vmax.bf16 %v3879_v40, %v1490_v52 }
 0x11e   : > { %v1553_v55 = vmax.bf16 %v3879_v40, %v1489_v54 }
 0x120   : > { %v3381_v57 = vpop.f32.mrb[20].mxu0  ;;  %3519 = vmatprep.mubr.bf16.mxu1 %v1553_v55 }
 0x121   : > { %v1050_v58 = vpop.f32.mrb[21].mxu0  ;;  %3520 = vmatmul.mubr.bf16.gmra.mrb[16].mxu1 %v1554_v56 }
 0x122   : > { %v3382_v59 = vpop.f32.mrb[22].mxu0 }
 0x123   : > { %v1492_v60 = vpack.c.bf16 %v3382_v59, %v3381_v57  ;;  %v1053_v61 = vpop.f32.mrb[23].mxu0 }
 0x124   : > { %v1491_v62 = vpack.c.bf16 %v1053_v61, %v1050_v58 }
 0x125   : > { %v1556_v0 = vmax.bf16 %v3879_v40, %v1492_v60 }
 0x126   : > { %v1555_v63 = vmax.bf16 %v3879_v40, %v1491_v62 }
 0x128   : > { %v3385_v1 = vpop.f32.mrb[24].mxu0  ;;  %3523 = vmatprep.mubr.bf16.mxu1 %v1555_v63 }
 0x129   : > { %v1066_v2 = vpop.f32.mrb[25].mxu0  ;;  %3524 = vmatmul.mubr.bf16.gmra.mrb[20].mxu1 %v1556_v0 }
 0x12a   : > { %v3386_v3 = vpop.f32.mrb[26].mxu0 }
 0x12b   : > { %v1494_v4 = vpack.c.bf16 %v3386_v3, %v3385_v1  ;;  %v1069_v5 = vpop.f32.mrb[27].mxu0 }
 0x12c   : > { %v1493_v6 = vpack.c.bf16 %v1069_v5, %v1066_v2 }
 0x12d   : > { %v1558_v8 = vmax.bf16 %v3879_v40, %v1494_v4 }
 0x12e   : > { %v1557_v7 = vmax.bf16 %v3879_v40, %v1493_v6 }
 0x130   : > { %v3389_v9 = vpop.f32.mrb[28].mxu0  ;;  %3527 = vmatprep.mubr.bf16.mxu1 %v1557_v7 }
 0x131   : > { %v1082_v10 = vpop.f32.mrb[29].mxu0  ;;  %3528 = vmatmul.mubr.bf16.gmra.mrb[24].mxu1 %v1558_v8 }
 0x132   : > { %v3390_v11 = vpop.f32.mrb[30].mxu0 }
 0x133   : > { %v1496_v12 = vpack.c.bf16 %v3390_v11, %v3389_v9  ;;  %v1085_v13 = vpop.f32.mrb[31].mxu0 }
 0x134   : > { %v1495_v14 = vpack.c.bf16 %v1085_v13, %v1082_v10 }
 0x135   : > { %v1560_v16 = vmax.bf16 %v3879_v40, %v1496_v12 }
 0x136   : > { %v1559_v15 = vmax.bf16 %v3879_v40, %v1495_v14 }
 0x138   : > { %v3393_v17 = vpop.f32.mrb[32].mxu0  ;;  %3531 = vmatprep.mubr.bf16.mxu1 %v1559_v15 }
 0x139   : > { %v1098_v18 = vpop.f32.mrb[33].mxu0  ;;  %3532 = vmatmul.mubr.bf16.gmra.mrb[28].mxu1 %v1560_v16 }
 0x13a   : > { %v3394_v19 = vpop.f32.mrb[34].mxu0 }
 0x13b   : > { %v1498_v20 = vpack.c.bf16 %v3394_v19, %v3393_v17  ;;  %v1101_v21 = vpop.f32.mrb[35].mxu0 }
 0x13c   : > { %v1497_v22 = vpack.c.bf16 %v1101_v21, %v1098_v18 }
 0x13d   : > { %v1562_v24 = vmax.bf16 %v3879_v40, %v1498_v20 }
 0x13e   : > { %v1561_v23 = vmax.bf16 %v3879_v40, %v1497_v22 }
 0x140   : > { %v3397_v25 = vpop.f32.mrb[36].mxu0  ;;  %3535 = vmatprep.mubr.bf16.mxu1 %v1561_v23 }
 0x141   : > { %v1114_v26 = vpop.f32.mrb[37].mxu0  ;;  %3536 = vmatmul.mubr.bf16.gmra.mrb[32].mxu1 %v1562_v24 }
 0x142   : > { %v3398_v27 = vpop.f32.mrb[38].mxu0 }
 0x143   : > { %v1500_v28 = vpack.c.bf16 %v3398_v27, %v3397_v25  ;;  %v1117_v29 = vpop.f32.mrb[39].mxu0 }
 0x144   : > { %v1499_v30 = vpack.c.bf16 %v1117_v29, %v1114_v26 }
 0x145   : > { %v1564_v32 = vmax.bf16 %v3879_v40, %v1500_v28 }
 0x146   : > { %v1563_v31 = vmax.bf16 %v3879_v40, %v1499_v30 }
 0x148   : > { %v3401_v33 = vpop.f32.mrb[40].mxu0  ;;  %3539 = vmatprep.mubr.bf16.mxu1 %v1563_v31 }
 0x149   : > { %v1130_v34 = vpop.f32.mrb[41].mxu0  ;;  %3540 = vmatmul.mubr.bf16.gmra.mrb[36].mxu1 %v1564_v32 }
 0x14a   : > { %v3402_v35 = vpop.f32.mrb[42].mxu0 }
 0x14b   : > { %v1502_v36 = vpack.c.bf16 %v3402_v35, %v3401_v33  ;;  %v1133_v37 = vpop.f32.mrb[43].mxu0 }
 0x14c   : > { %v1501_v38 = vpack.c.bf16 %v1133_v37, %v1130_v34 }
 0x14d   : > { %v1566_v41 = vmax.bf16 %v3879_v40, %v1502_v36 }
 0x14e   : > { %v1565_v39 = vmax.bf16 %v3879_v40, %v1501_v38 }
 0x150   : > { %v3405_v42 = vpop.f32.mrb[44].mxu0  ;;  %3543 = vmatprep.mubr.bf16.mxu1 %v1565_v39 }
 0x151   : > { %v1146_v43 = vpop.f32.mrb[45].mxu0  ;;  %3544 = vmatmul.mubr.bf16.gmra.mrb[40].mxu1 %v1566_v41 }
 0x152   : > { %v3406_v44 = vpop.f32.mrb[46].mxu0 }
 0x153   : > { %v1504_v45 = vpack.c.bf16 %v3406_v44, %v3405_v42  ;;  %v1149_v46 = vpop.f32.mrb[47].mxu0 }
 0x154   : > { %v1503_v47 = vpack.c.bf16 %v1149_v46, %v1146_v43 }
 0x155   : > { %v1568_v49 = vmax.bf16 %v3879_v40, %v1504_v45 }
 0x156   : > { %v1567_v48 = vmax.bf16 %v3879_v40, %v1503_v47 }
 0x158   : > { %v3409_v50 = vpop.f32.mrb[48].mxu0  ;;  %3547 = vmatprep.mubr.bf16.mxu1 %v1567_v48 }
 0x159   : > { %v1162_v51 = vpop.f32.mrb[49].mxu0  ;;  %3548 = vmatmul.mubr.bf16.gmra.mrb[44].mxu1 %v1568_v49 }
 0x15a   : > { %v3410_v52 = vpop.f32.mrb[50].mxu0 }
 0x15b   : > { %v1506_v53 = vpack.c.bf16 %v3410_v52, %v3409_v50  ;;  %v1165_v54 = vpop.f32.mrb[51].mxu0 }
 0x15c   : > { %v1505_v55 = vpack.c.bf16 %v1165_v54, %v1162_v51 }
 0x15d   : > { %v1570_v57 = vmax.bf16 %v3879_v40, %v1506_v53 }
 0x15e   : > { %v1569_v56 = vmax.bf16 %v3879_v40, %v1505_v55 }
 0x160   : > { %3551 = vmatprep.mubr.bf16.mxu1 %v1569_v56  ;;  %v3413_v58 = vpop.f32.mrb[52].mxu0 }
 0x161   : > { %3552 = vmatmul.mubr.bf16.gmra.mrb[48].mxu1 %v1570_v57  ;;  %v1178_v59 = vpop.f32.mrb[53].mxu0 }
 0x162   : > { %v3414_v60 = vpop.f32.mrb[54].mxu0 }
 0x163   : > { %v1508_v61 = vpack.c.bf16 %v3414_v60, %v3413_v58  ;;  %v1181_v62 = vpop.f32.mrb[55].mxu0 }
 0x164   : > { %v1507_v63 = vpack.c.bf16 %v1181_v62, %v1178_v59 }
 0x165   : > { %v1572_v1 = vmax.bf16 %v3879_v40, %v1508_v61 }
 0x166   : > { %v1571_v0 = vmax.bf16 %v3879_v40, %v1507_v63 }
 0x168   : > { %3555 = vmatprep.mubr.bf16.mxu1 %v1571_v0  ;;  %v3417_v2 = vpop.f32.mrb[56].mxu0 }
 0x169   : > { %3556 = vmatmul.mubr.bf16.gmra.mrb[52].mxu1 %v1572_v1  ;;  %v1194_v3 = vpop.f32.mrb[57].mxu0 }
 0x16a   : > { %v3418_v4 = vpop.f32.mrb[58].mxu0 }
 0x16b   : > { %v1510_v5 = vpack.c.bf16 %v3418_v4, %v3417_v2  ;;  %v1197_v6 = vpop.f32.mrb[59].mxu0 }
 0x16c   : > { %v1509_v7 = vpack.c.bf16 %v1197_v6, %v1194_v3 }
 0x16d   : > { %v1574_v9 = vmax.bf16 %v3879_v40, %v1510_v5 }
 0x16e   : > { %v1573_v8 = vmax.bf16 %v3879_v40, %v1509_v7 }
 0x170   : > { %3559 = vmatprep.mubr.bf16.mxu1 %v1573_v8  ;;  %v3421_v10 = vpop.f32.mrb[60].mxu0 }
 0x171   : > { %3560 = vmatmul.mubr.bf16.gmra.mrb[56].mxu1 %v1574_v9  ;;  %v1210_v11 = vpop.f32.mrb[61].mxu0 }
 0x172   : > { %v3422_v12 = vpop.f32.mrb[62].mxu0 }
 0x173   : > { %v1512_v13 = vpack.c.bf16 %v3422_v12, %v3421_v10  ;;  %v1213_v14 = vpop.f32.mrb[63].mxu0 }
 0x174   : > { %v1511_v15 = vpack.c.bf16 %v1213_v14, %v1210_v11 }
 0x175   : > { %v1576_v17 = vmax.bf16 %v3879_v40, %v1512_v13 }
 0x176   : > { %v1575_v16 = vmax.bf16 %v3879_v40, %v1511_v15 }
 0x178   : > { %3563 = vmatprep.mubr.bf16.mxu1 %v1575_v16  ;;  %v3425_v18 = vpop.f32.mrb[64].mxu0 }
 0x179   : > { %3564 = vmatmul.mubr.bf16.gmra.mrb[60].mxu1 %v1576_v17  ;;  %v1226_v19 = vpop.f32.mrb[65].mxu0 }
 0x17a   : > { %v3426_v20 = vpop.f32.mrb[66].mxu0 }
 0x17b   : > { %v1514_v21 = vpack.c.bf16 %v3426_v20, %v3425_v18  ;;  %v1229_v22 = vpop.f32.mrb[67].mxu0 }
 0x17c   : > { %v1513_v23 = vpack.c.bf16 %v1229_v22, %v1226_v19 }
 0x17d   : > { %v1578_v25 = vmax.bf16 %v3879_v40, %v1514_v21 }
 0x17e   : > { %v1577_v24 = vmax.bf16 %v3879_v40, %v1513_v23 }
 0x180   : > { %v3429_v26 = vpop.f32.mrb[68].mxu0  ;;  %3567 = vmatprep.mubr.bf16.mxu1 %v1577_v24 }
 0x181   : > { %v1242_v27 = vpop.f32.mrb[69].mxu0  ;;  %3568 = vmatmul.mubr.bf16.gmra.mrb[64].mxu1 %v1578_v25 }
 0x182   : > { %v3430_v28 = vpop.f32.mrb[70].mxu0 }
 0x183   : > { %v1516_v29 = vpack.c.bf16 %v3430_v28, %v3429_v26  ;;  %v1245_v30 = vpop.f32.mrb[71].mxu0 }
 0x184   : > { %v1515_v31 = vpack.c.bf16 %v1245_v30, %v1242_v27 }
 0x185   : > { %v1580_v33 = vmax.bf16 %v3879_v40, %v1516_v29 }
 0x186   : > { %v1579_v32 = vmax.bf16 %v3879_v40, %v1515_v31 }
 0x188   : > { %v3433_v34 = vpop.f32.mrb[72].mxu0  ;;  %3571 = vmatprep.mubr.bf16.mxu1 %v1579_v32 }
 0x189   : > { %v1258_v35 = vpop.f32.mrb[73].mxu0  ;;  %3572 = vmatmul.mubr.bf16.gmra.mrb[68].mxu1 %v1580_v33 }
 0x18a   : > { %v3434_v36 = vpop.f32.mrb[74].mxu0 }
 0x18b   : > { %v1518_v37 = vpack.c.bf16 %v3434_v36, %v3433_v34  ;;  %v1261_v38 = vpop.f32.mrb[75].mxu0 }
 0x18c   : > { %v1517_v39 = vpack.c.bf16 %v1261_v38, %v1258_v35 }
 0x18d   : > { %v1582_v42 = vmax.bf16 %v3879_v40, %v1518_v37 }
 0x18e   : > { %v1581_v41 = vmax.bf16 %v3879_v40, %v1517_v39 }
 0x190   : > { %v3437_v43 = vpop.f32.mrb[76].mxu0  ;;  %3575 = vmatprep.mubr.bf16.mxu1 %v1581_v41 }
 0x191   : > { %v1274_v44 = vpop.f32.mrb[77].mxu0  ;;  %3576 = vmatmul.mubr.bf16.gmra.mrb[72].mxu1 %v1582_v42 }
 0x192   : > { %v3438_v45 = vpop.f32.mrb[78].mxu0 }
 0x193   : > { %v1520_v46 = vpack.c.bf16 %v3438_v45, %v3437_v43  ;;  %v1277_v47 = vpop.f32.mrb[79].mxu0 }
 0x194   : > { %v1519_v48 = vpack.c.bf16 %v1277_v47, %v1274_v44 }
 0x195   : > { %v1584_v50 = vmax.bf16 %v3879_v40, %v1520_v46 }
 0x196   : > { %v1583_v49 = vmax.bf16 %v3879_v40, %v1519_v48 }
 0x198   : > { %v3441_v51 = vpop.f32.mrb[80].mxu0  ;;  %3579 = vmatprep.mubr.bf16.mxu1 %v1583_v49 }
 0x199   : > { %v1290_v52 = vpop.f32.mrb[81].mxu0  ;;  %3580 = vmatmul.mubr.bf16.gmra.mrb[76].mxu1 %v1584_v50 }
 0x19a   : > { %v3442_v53 = vpop.f32.mrb[82].mxu0 }
 0x19b   : > { %v1522_v54 = vpack.c.bf16 %v3442_v53, %v3441_v51  ;;  %v1293_v55 = vpop.f32.mrb[83].mxu0 }
 0x19c   : > { %v1521_v56 = vpack.c.bf16 %v1293_v55, %v1290_v52 }
 0x19d   : > { %v1586_v58 = vmax.bf16 %v3879_v40, %v1522_v54 }
 0x19e   : > { %v1585_v57 = vmax.bf16 %v3879_v40, %v1521_v56 }
 0x1a0   : > { %v3445_v59 = vpop.f32.mrb[84].mxu0  ;;  %3583 = vmatprep.mubr.bf16.mxu1 %v1585_v57 }
 0x1a1   : > { %v1306_v60 = vpop.f32.mrb[85].mxu0  ;;  %3584 = vmatmul.mubr.bf16.gmra.mrb[80].mxu1 %v1586_v58 }
 0x1a2   : > { %v3446_v61 = vpop.f32.mrb[86].mxu0 }
 0x1a3   : > { %v1524_v62 = vpack.c.bf16 %v3446_v61, %v3445_v59  ;;  %v1309_v63 = vpop.f32.mrb[87].mxu0 }
 0x1a4   : > { %v1523_v0 = vpack.c.bf16 %v1309_v63, %v1306_v60 }
 0x1a5   : > { %v1588_v2 = vmax.bf16 %v3879_v40, %v1524_v62 }
 0x1a6   : > { %v1587_v1 = vmax.bf16 %v3879_v40, %v1523_v0 }
 0x1a8   : > { %v3449_v3 = vpop.f32.mrb[88].mxu0  ;;  %3587 = vmatprep.mubr.bf16.mxu1 %v1587_v1 }
 0x1a9   : > { %v1322_v4 = vpop.f32.mrb[89].mxu0  ;;  %3588 = vmatmul.mubr.bf16.gmra.mrb[84].mxu1 %v1588_v2 }
 0x1aa   : > { %v3450_v5 = vpop.f32.mrb[90].mxu0 }
 0x1ab   : > { %v1526_v6 = vpack.c.bf16 %v3450_v5, %v3449_v3  ;;  %v1325_v7 = vpop.f32.mrb[91].mxu0 }
 0x1ac   : > { %v1525_v8 = vpack.c.bf16 %v1325_v7, %v1322_v4 }
 0x1ad   : > { %v1590_v10 = vmax.bf16 %v3879_v40, %v1526_v6 }
 0x1ae   : > { %v1589_v9 = vmax.bf16 %v3879_v40, %v1525_v8 }
 0x1b0   : > { %v3453_v11 = vpop.f32.mrb[92].mxu0  ;;  %3591 = vmatprep.mubr.bf16.mxu1 %v1589_v9 }
 0x1b1   : > { %v1338_v12 = vpop.f32.mrb[93].mxu0  ;;  %3592 = vmatmul.mubr.bf16.gmra.mrb[88].mxu1 %v1590_v10 }
 0x1b2   : > { %v3454_v13 = vpop.f32.mrb[94].mxu0 }
 0x1b3   : > { %v1528_v14 = vpack.c.bf16 %v3454_v13, %v3453_v11  ;;  %v1341_v15 = vpop.f32.mrb[95].mxu0 }
 0x1b4   : > { %v1527_v16 = vpack.c.bf16 %v1341_v15, %v1338_v12 }
 0x1b5   : > { %v1592_v18 = vmax.bf16 %v3879_v40, %v1528_v14 }
 0x1b6   : > { %v1591_v17 = vmax.bf16 %v3879_v40, %v1527_v16 }
 0x1b8   : > { %v3457_v19 = vpop.f32.mrb[96].mxu0  ;;  %3595 = vmatprep.mubr.bf16.mxu1 %v1591_v17  ;;  %v2286_v17 = vlaneseq }
 0x1b9   : > { %v1354_v20 = vpop.f32.mrb[97].mxu0  ;;  %3596 = vmatmul.mubr.bf16.gmra.mrb[92].mxu1 %v1592_v18 }
 0x1ba   : > { %v3458_v21 = vpop.f32.mrb[98].mxu0 }
 0x1bb   : > { %v1530_v22 = vpack.c.bf16 %v3458_v21, %v3457_v19  ;;  %v1357_v23 = vpop.f32.mrb[99].mxu0 }
 0x1bc   : > { %v1529_v24 = vpack.c.bf16 %v1357_v23, %v1354_v20 }
 0x1bd   : > { %v1594_v26 = vmax.bf16 %v3879_v40, %v1530_v22 }
 0x1be   : > { %v1593_v25 = vmax.bf16 %v3879_v40, %v1529_v24 }
 0x1c0   : > { %v3461_v27 = vpop.f32.mrb[100].mxu0  ;;  %3599 = vmatprep.mubr.bf16.mxu1 %v1593_v25  ;;  %v4238_v25 = vshrl.u32 %v2286_v17, 7 }
 0x1c1   : > { %v1370_v28 = vpop.f32.mrb[101].mxu0  ;;  %3600 = vmatmul.mubr.bf16.gmra.mrb[96].mxu1 %v1594_v26 }
 0x1c2   : > { %v3462_v29 = vpop.f32.mrb[102].mxu0 }
 0x1c3   : > { %v1532_v30 = vpack.c.bf16 %v3462_v29, %v3461_v27  ;;  %v1373_v31 = vpop.f32.mrb[103].mxu0  ;;  %v2282_v27 = vld [vmem:[%s4726_s3] sm:$0x1] }
 0x1c4   : > { %v1531_v32 = vpack.c.bf16 %v1373_v31, %v1370_v28 }
 0x1c5   : > { %v1596_v34 = vmax.bf16 %v3879_v40, %v1532_v30 }
 0x1c6   : > { %v1595_v33 = vmax.bf16 %v3879_v40, %v1531_v32 }
 0x1c8   : > { %v3465_v35 = vpop.f32.mrb[104].mxu0  ;;  %3603 = vmatprep.mubr.bf16.mxu1 %v1595_v33 }
 0x1c9   : > { %v1386_v36 = vpop.f32.mrb[105].mxu0  ;;  %3604 = vmatmul.mubr.bf16.gmra.mrb[100].mxu1 %v1596_v34  ;;  %v2284_v34 = vpack.i.b16 %v2282_v27, %v2282_v27 }
 0x1ca   : > { %v3466_v37 = vpop.f32.mrb[106].mxu0 }
 0x1cb   : > { %v1534_v38 = vpack.c.bf16 %v3466_v37, %v3465_v35  ;;  %v1389_v39 = vpop.f32.mrb[107].mxu0  ;;  %v2288_v35 = vsub.s32 0, %v4238_v25 }
 0x1cc   : > { %v1533_v41 = vpack.c.bf16 %v1389_v39, %v1386_v36 }
 0x1cd   : > { %v1598_v43 = vmax.bf16 %v3879_v40, %v1534_v38 }
 0x1ce   : > { %v1597_v42 = vmax.bf16 %v3879_v40, %v1533_v41 }
 0x1d0   : > { %v3469_v44 = vpop.f32.mrb[108].mxu0  ;;  %3607 = vmatprep.mubr.bf16.mxu1 %v1597_v42 }
 0x1d1   : > { %v1402_v45 = vpop.f32.mrb[109].mxu0  ;;  %3608 = vmatmul.mubr.bf16.gmra.mrb[104].mxu1 %v1598_v43 }
 0x1d2   : > { %v3470_v46 = vpop.f32.mrb[110].mxu0 }
 0x1d3   : > { %v1536_v47 = vpack.c.bf16 %v3470_v46, %v3469_v44  ;;  %v1405_v48 = vpop.f32.mrb[111].mxu0  ;;  %v4260_v44 = vrot.slane %v2284_v34, %v2288_v35 }
 0x1d4   : > { %v4196_v49 = vpop.f32.mrb[0].mxu1  ;;  %v1535_v50 = vpack.c.bf16 %v1405_v48, %v1402_v45 }
 0x1d5   : > { %v4198_v51 = vpop.f32.mrb[1].mxu1  ;;  %v1600_v56 = vmax.bf16 %v3879_v40, %v1536_v47 }
 0x1d6   : > { %v4200_v52 = vpop.f32.mrb[2].mxu1  ;;  %v1599_v53 = vmax.bf16 %v3879_v40, %v1535_v50 }
 0x1d7   : > { %v2219_v54 = vpack.c.bf16 %v4200_v52, %v4196_v49  ;;  %v4205_v55 = vpop.f32.mrb[3].mxu1 }
 0x1d8   : > { %v2218_v57 = vpack.c.bf16 %v4205_v55, %v4198_v51  ;;  %v3473_v58 = vpop.f32.mrb[112].mxu0  ;;  %3611 = vmatprep.mubr.bf16.mxu1 %v1599_v53  ;;  %v4275_v55 = vld [vmem:[%s4727_s4] sm:$0x1] }
 0x1d9   : > { %v1418_v59 = vpop.f32.mrb[113].mxu0  ;;  %3612 = vmatmul.mubr.bf16.gmra.mrb[108].mxu1 %v1600_v56  ;;  %3293 = vmatprep.mubr.msk.bf16.mxu0 %vm2429_vm2, %v4275_v55 }
 0x1da   : > { %v3474_v60 = vpop.f32.mrb[114].mxu0 }
 0x1db   : > { %v1538_v61 = vpack.c.bf16 %v3474_v60, %v3473_v58  ;;  %v1421_v62 = vpop.f32.mrb[115].mxu0  ;;  %v2290_v58 = vadd.bf16 %v4260_v44, %v2218_v57 }
 0x1dc   : > { %v4210_v63 = vpop.f32.mrb[4].mxu1  ;;  %v1537_v0 = vpack.c.bf16 %v1421_v62, %v1418_v59 }
 0x1dd   : > { %v4212_v1 = vpop.f32.mrb[5].mxu1  ;;  %v1602_v6 = vmax.bf16 %v3879_v40, %v1538_v61 }
 0x1de   : > { %v4214_v2 = vpop.f32.mrb[6].mxu1  ;;  %v1601_v3 = vmax.bf16 %v3879_v40, %v1537_v0 }
 0x1df   : > { %v2221_v4 = vpack.c.bf16 %v4214_v2, %v4210_v63  ;;  %v4219_v5 = vpop.f32.mrb[7].mxu1 }
 0x1e0   : > { %v2220_v7 = vpack.c.bf16 %v4219_v5, %v4212_v1  ;;  %3615 = vmatprep.mubr.bf16.mxu1 %v1601_v3  ;;  %v3477_v8 = vpop.f32.mrb[116].mxu0  ;;  %v2354_v3 = vmax.bf16 %v3879_v40, %v2290_v58 }
 0x1e1   : > { %3616 = vmatmul.mubr.bf16.gmra.mrb[112].mxu1 %v1602_v6  ;;  %v1434_v9 = vpop.f32.mrb[117].mxu0  ;;  %v2293_v1 = vadd.bf16 %v4260_v44, %v2221_v4 }
 0x1e2   : > { %v3478_v10 = vpop.f32.mrb[118].mxu0 }
 0x1e3   : > { %v1540_v11 = vpack.c.bf16 %v3478_v10, %v3477_v8  ;;  %v1437_v12 = vpop.f32.mrb[119].mxu0  ;;  %v2291_v10 = vadd.bf16 %v4260_v44, %v2219_v54  ;;  %v2292_v54 = vadd.bf16 %v4260_v44, %v2220_v7 }
 0x1e4   : > { %v4224_v13 = vpop.f32.mrb[8].mxu1  ;;  %v1539_v14 = vpack.c.bf16 %v1437_v12, %v1434_v9 }
 0x1e5   : > { %v4226_v15 = vpop.f32.mrb[9].mxu1  ;;  %v1604_v16 = vmax.bf16 %v3879_v40, %v1540_v11  ;;  %v2356_v34 = vmax.bf16 %v3879_v40, %v2292_v54 }
 0x1e6   : > { %v4229_v18 = vpop.f32.mrb[10].mxu1  ;;  %v1603_v19 = vmax.bf16 %v3879_v40, %v1539_v14  ;;  %v2434_v14 = vsel %vm2429_vm2, %v2354_v3, 0 }
 0x1e7   : > { %v2223_v20 = vpack.c.bf16 %v4229_v18, %v4224_v13  ;;  %v4234_v21 = vpop.f32.mrb[11].mxu1 }
 0x1e8   : > { %v2222_v22 = vpack.c.bf16 %v4234_v21, %v4226_v15  ;;  %3619 = vmatprep.mubr.bf16.mxu1 %v1603_v19  ;;  %v3481_v23 = vpop.f32.mrb[120].mxu0 }
 0x1e9   : > { %3620 = vmatmul.mubr.bf16.gmra.mrb[116].mxu1 %v1604_v16  ;;  %v1450_v24 = vpop.f32.mrb[121].mxu0  ;;  %v2295_v3 = vadd.bf16 %v4260_v44, %v2223_v20 }
 0x1ea   : > { %v3482_v26 = vpop.f32.mrb[122].mxu0  ;;  %v2294_v2 = vadd.bf16 %v4260_v44, %v2222_v22 }
 0x1eb   : > { %v1542_v28 = vpack.c.bf16 %v3482_v26, %v3481_v23  ;;  %v1453_v29 = vpop.f32.mrb[123].mxu0  ;;  %v2355_v23 = vmax.bf16 %v3879_v40, %v2291_v10  ;;  %v2359_v13 = vmax.bf16 %v3879_v40, %v2295_v3 }
 0x1ec   : > { %v4243_v30 = vpop.f32.mrb[12].mxu1  ;;  %v1541_v31 = vpack.c.bf16 %v1453_v29, %v1450_v24 }
 0x1ed   : > { %v4245_v32 = vpop.f32.mrb[13].mxu1  ;;  %v1606_v33 = vmax.bf16 %v3879_v40, %v1542_v28  ;;  %v2437_v28 = vsel %vm2429_vm2, %v2355_v23, 0 }
 0x1ee   : > { %v4249_v36 = vpop.f32.mrb[14].mxu1  ;;  %v1605_v37 = vmax.bf16 %v3879_v40, %v1541_v31 }
 0x1ef   : > { %v2225_v38 = vpack.c.bf16 %v4249_v36, %v4243_v30  ;;  %v4254_v39 = vpop.f32.mrb[15].mxu1 }
 0x1f0   : > { %v2224_v41 = vpack.c.bf16 %v4254_v39, %v4245_v32  ;;  %3623 = vmatprep.mubr.bf16.mxu1 %v1605_v37  ;;  %v3485_v42 = vpop.f32.mrb[124].mxu0 }
 0x1f1   : > { %3624 = vmatmul.mubr.bf16.gmra.mrb[120].mxu1 %v1606_v33  ;;  %v1466_v43 = vpop.f32.mrb[125].mxu0 }
 0x1f2   : > { %v3486_v45 = vpop.f32.mrb[126].mxu0 }
 0x1f3   : > { %v1544_v46 = vpack.c.bf16 %v3486_v45, %v3485_v42  ;;  %v1469_v47 = vpop.f32.mrb[127].mxu0  ;;  %v2440_v45 = vsel %vm2429_vm2, %v2356_v34, 0 }
 0x1f4   : > { %v3521_v48 = vpop.f32.mrb[16].mxu1  ;;  %v1543_v50 = vpack.c.bf16 %v1469_v47, %v1466_v43 }
 0x1f5   : > { %v1771_v53 = vpop.f32.mrb[17].mxu1  ;;  %v1608_v56 = vmax.bf16 %v3879_v40, %v1544_v46 }
 0x1f6   : > { %v3522_v59 = vpop.f32.mrb[18].mxu1  ;;  %v1607_v60 = vmax.bf16 %v3879_v40, %v1543_v50  ;;  %v2357_v50 = vmax.bf16 %v3879_v40, %v2293_v1 }
 0x1f7   : > { %v2227_v61 = vpack.c.bf16 %v3522_v59, %v3521_v48  ;;  %v1774_v62 = vpop.f32.mrb[19].mxu1 }
 0x1f8   : > { %v2226_v0 = vpack.c.bf16 %v1774_v62, %v1771_v53  ;;  %3627 = vmatprep.mubr.bf16.mxu1 %v1607_v60  ;;  %v2443_v59 = vsel %vm2429_vm2, %v2357_v50, 0 }
 0x1f9   : > { %3628 = vmatmul.mubr.bf16.gmra.mrb[124].mxu1 %v1608_v56  ;;  %v2299_v6 = vadd.bf16 %v4260_v44, %v2227_v61 }
 0x1fa   : > { %v2298_v8 = vadd.bf16 %v4260_v44, %v2226_v0  ;;  %3311 = vmatprep.mubr.msk.bf16.mxu1 %vm2429_vm2, %v4275_v55  ;;  %v2358_v0 = vmax.bf16 %v3879_v40, %v2294_v2 }
 0x1fb   : > { %v2363_v11 = vmax.bf16 %v3879_v40, %v2299_v6 }
 0x1fc   : > { %v2362_v9 = vmax.bf16 %v3879_v40, %v2298_v8  ;;  %v3525_v51 = vpop.f32.mrb[20].mxu1 }
 0x1fd   : > { %v1787_v57 = vpop.f32.mrb[21].mxu1 }
 0x1fe   : > { %v3526_v12 = vpop.f32.mrb[22].mxu1  ;;  %3632 = vmatprep.subr.msk.bf16.mxu0 %vm2429_vm2, %v2362_v9  ;;  %v2446_v9 = vsel %vm2429_vm2, %v2358_v0, 0 }
 0x1ff   : > { %v2229_v16 = vpack.c.bf16 %v3526_v12, %v3525_v51  ;;  %v1790_v17 = vpop.f32.mrb[23].mxu1  ;;  %3278 = vmatpush3.bf16.xpose.msra.mxu0 %v2434_v14  ;;  %v2296_v12 = vadd.bf16 %v4260_v44, %v2224_v41 }
 0x200   : > { %v2228_v19 = vpack.c.bf16 %v1790_v17, %v1787_v57  ;;  %3633 = vmatprep.subr.msk.bf16.mxu0 %vm2429_vm2, %v2363_v11  ;;  %v2449_v17 = vsel %vm2429_vm2, %v2359_v13, 0 }
 0x201   : > { %v2301_v37 = vadd.bf16 %v4260_v44, %v2229_v16  ;;  %v2360_v32 = vmax.bf16 %v3879_v40, %v2296_v12 }
 0x202   : > { %v2300_v24 = vadd.bf16 %v4260_v44, %v2228_v19 }
 0x203   : > { %v2365_v5 = vmax.bf16 %v3879_v40, %v2301_v37 }
 0x204   : > { %v3529_v49 = vpop.f32.mrb[24].mxu1  ;;  %v2364_v26 = vmax.bf16 %v3879_v40, %v2300_v24 }
 0x205   : > { %v1803_v52 = vpop.f32.mrb[25].mxu1 }
 0x206   : > { %v3530_v27 = vpop.f32.mrb[26].mxu1 }
 0x207   : > { %v2231_v29 = vpack.c.bf16 %v3530_v27, %v3529_v49  ;;  %v1806_v31 = vpop.f32.mrb[27].mxu1  ;;  %3280 = vmatpush3.bf16.xpose.msra.mxu0 %v2437_v28  ;;  %v2452_v27 = vsel %vm2429_vm2, %v2360_v32, 0 }
 0x208   : > { %v2230_v33 = vpack.c.bf16 %v1806_v31, %v1803_v52  ;;  %3634 = vmatprep.subr.msk.bf16.mxu0 %vm2429_vm2, %v2364_v26  ;;  %v2297_v52 = vadd.bf16 %v4260_v44, %v2225_v38 }
 0x209   : > { %v2303_v15 = vadd.bf16 %v4260_v44, %v2231_v29 }
 0x20a   : > { %v2302_v53 = vadd.bf16 %v4260_v44, %v2230_v33  ;;  %v2361_v30 = vmax.bf16 %v3879_v40, %v2297_v52 }
 0x20b   : > { %v2367_v6 = vmax.bf16 %v3879_v40, %v2303_v15 }
 0x20c   : > { %v3533_v42 = vpop.f32.mrb[28].mxu1  ;;  %v2366_v4 = vmax.bf16 %v3879_v40, %v2302_v53  ;;  %v2455_v37 = vsel %vm2429_vm2, %v2361_v30, 0 }
 0x20d   : > { %v1819_v43 = vpop.f32.mrb[29].mxu1 }
 0x20e   : > { %v3534_v7 = vpop.f32.mrb[30].mxu1 }
 0x20f   : > { %v2233_v46 = vpack.c.bf16 %v3534_v7, %v3533_v42  ;;  %v1822_v47 = vpop.f32.mrb[31].mxu1  ;;  %3282 = vmatpush3.bf16.xpose.msra.mxu0 %v2440_v45 }
 0x210   : > { %v2232_v48 = vpack.c.bf16 %v1822_v47, %v1819_v43  ;;  %3635 = vmatprep.subr.msk.bf16.mxu0 %vm2429_vm2, %v2365_v5 }
 0x211   : > { %v2305_v39 = vadd.bf16 %v4260_v44, %v2233_v46 }
 0x212   : > { %v2304_v18 = vadd.bf16 %v4260_v44, %v2232_v48 }
 0x213   : > { %v2369_v54 = vmax.bf16 %v3879_v40, %v2305_v39 }
 0x214   : > { %v4309_v56 = vpop.f32.mrb[32].mxu1  ;;  %v2368_v14 = vmax.bf16 %v3879_v40, %v2304_v18 }
 0x215   : > { %v1835_v63 = vpop.f32.mrb[33].mxu1 }
 0x216   : > { %v4316_v58 = vpop.f32.mrb[34].mxu1 }
 0x217   : > { %v2235_v60 = vpack.c.bf16 %v4316_v58, %v4309_v56  ;;  %v1838_v61 = vpop.f32.mrb[35].mxu1  ;;  %3284 = vmatpush3.bf16.xpose.msra.mxu0 %v2443_v59 }
 0x218   : > { %v2234_v62 = vpack.c.bf16 %v1838_v61, %v1835_v63  ;;  %3636 = vmatprep.subr.msk.bf16.mxu0 %vm2429_vm2, %v2366_v4 }
 0x219   : > { %v2307_v50 = vadd.bf16 %v4260_v44, %v2235_v60 }
 0x21a   : > { %v2306_v33 = vadd.bf16 %v4260_v44, %v2234_v62 }
 0x21b   : > { %v2371_v59 = vmax.bf16 %v3879_v40, %v2307_v50 }
 0x21c   : > { %v4324_v21 = vpop.f32.mrb[36].mxu1  ;;  %v2370_v5 = vmax.bf16 %v3879_v40, %v2306_v33 }
 0x21d   : > { %v4326_v22 = vpop.f32.mrb[37].mxu1 }
 0x21e   : > { %v4333_v8 = vpop.f32.mrb[38].mxu1  ;;  %v2482_v56 = vsel %vm2429_vm2, %v2370_v5, 0 }
 0x21f   : > { %v2237_v51 = vpack.c.bf16 %v4333_v8, %v4324_v21  ;;  %v4338_v57 = vpop.f32.mrb[39].mxu1  ;;  %3286 = vmatpush3.bf16.xpose.msra.mxu0 %v2446_v9 }
 0x220   : > { %v2236_v10 = vpack.c.bf16 %v4338_v57, %v4326_v22  ;;  %3637 = vmatprep.subr.msk.bf16.mxu0 %vm2429_vm2, %v2367_v6  ;;  %v2485_v22 = vsel %vm2429_vm2, %v2371_v59, 0 }
 0x222   : > { %v2308_v0 = vadd.bf16 %v4260_v44, %v2236_v10  ;;  %v2309_v10 = vadd.bf16 %v4260_v44, %v2237_v51 }
 0x224   : > { %v4345_v20 = vpop.f32.mrb[40].mxu1  ;;  %v2372_v13 = vmax.bf16 %v3879_v40, %v2308_v0  ;;  %v2373_v30 = vmax.bf16 %v3879_v40, %v2309_v10 }
 0x225   : > { %v4347_v11 = vpop.f32.mrb[41].mxu1 }
 0x226   : > { %v4354_v16 = vpop.f32.mrb[42].mxu1  ;;  %v2488_v32 = vsel %vm2429_vm2, %v2372_v13, 0  ;;  %v2491_v33 = vsel %vm2429_vm2, %v2373_v30, 0 }
 0x227   : > { %v2239_v19 = vpack.c.bf16 %v4354_v16, %v4345_v20  ;;  %v4359_v23 = vpop.f32.mrb[43].mxu1  ;;  %3288 = vmatpush3.bf16.xpose.msra.mxu0 %v2449_v17 }
 0x228   : > { %v2238_v24 = vpack.c.bf16 %v4359_v23, %v4347_v11  ;;  %3638 = vmatprep.subr.msk.bf16.mxu0 %vm2429_vm2, %v2368_v14 }
 0x229   : > { %v2311_v23 = vadd.bf16 %v4260_v44, %v2239_v19 }
 0x22a   : > { %v2310_v8 = vadd.bf16 %v4260_v44, %v2238_v24 }
 0x22b   : > { %v2375_v20 = vmax.bf16 %v3879_v40, %v2311_v23 }
 0x22c   : > { %v4366_v41 = vpop.f32.mrb[44].mxu1 }
 0x22d   : > { %v4368_v49 = vpop.f32.mrb[45].mxu1 }
 0x22e   : > { %v4375_v26 = vpop.f32.mrb[46].mxu1 }
 0x22f   : > { %v2241_v28 = vpack.c.bf16 %v4375_v26, %v4366_v41  ;;  %v4380_v29 = vpop.f32.mrb[47].mxu1  ;;  %3290 = vmatpush3.bf16.xpose.msra.mxu0 %v2452_v27 }
 0x230   : > { %v2240_v31 = vpack.c.bf16 %v4380_v29, %v4368_v49  ;;  %3639 = vmatprep.subr.msk.bf16.mxu0 %vm2429_vm2, %v2369_v54 }
 0x234   : > { %v3553_v36 = vpop.f32.mrb[48].mxu1 }
 0x235   : > { %v1899_v38 = vpop.f32.mrb[49].mxu1 }
 0x236   : > { %v3554_v34 = vpop.f32.mrb[50].mxu1 }
 0x237   : > { %v2243_v42 = vpack.c.bf16 %v3554_v34, %v3553_v36  ;;  %v1902_v43 = vpop.f32.mrb[51].mxu1  ;;  %3292 = vmatpush3.bf16.xpose.msra.mxu0 %v2455_v37 }
 0x238   : > { %v2242_v1 = vpack.c.bf16 %v1902_v43, %v1899_v38 }
 0x239   : > { %v2315_v7 = vadd.bf16 %v4260_v44, %v2243_v42 }
 0x23a   : > { %v2314_v45 = vadd.bf16 %v4260_v44, %v2242_v1  ;;  %v2374_v1 = vmax.bf16 %v3879_v40, %v2310_v8  ;;  %v2419_v8 = vld [vmem:[#allocation2] sm:$0x1] }
 0x23b   : > { %v2379_v53 = vmax.bf16 %v3879_v40, %v2315_v7  ;;  %2422 = vperm.xlu0 %3705, %v2419_v8  }
 0x23c   : > { %v2378_v46 = vmax.bf16 %v3879_v40, %v2314_v45  ;;  %v3557_v47 = vpop.f32.mrb[52].mxu1  ;;  %v2494_v45 = vsel %vm2429_vm2, %v2374_v1, 0 }
 0x23d   : > { %v1915_v48 = vpop.f32.mrb[53].mxu1 }
 0x23e   : > { %3640 = vmatprep.subr.msk.bf16.mxu1 %vm2429_vm2, %v2378_v46  ;;  %v3558_v63 = vpop.f32.mrb[54].mxu1  ;;  %3294 = vmatmul.mubr.msk.bf16.vlgmr.msra.gmra.mrb[128].mxu0 %vm2429_vm2, %v4275_v55 }
 0x23f   : > { %3296 = vmatpush3.bf16.xpose.msra.mxu1 %v2482_v56  ;;  %v2245_v2 = vpack.c.bf16 %v3558_v63, %v3557_v47  ;;  %v1918_v4 = vpop.f32.mrb[55].mxu1  ;;  %3329 = vmatprep.mubr.msk.bf16.mxu0 %vm2429_vm2, %v4275_v55  ;;  %v2312_v56 = vadd.bf16 %v4260_v44, %v2240_v31 }
 0x240   : > { %3641 = vmatprep.subr.msk.bf16.mxu1 %vm2429_vm2, %v2379_v53  ;;  %v2244_v58 = vpack.c.bf16 %v1918_v4, %v1915_v48 }
 0x241   : > { %v2317_v18 = vadd.bf16 %v4260_v44, %v2245_v2  ;;  %v2497_v2 = vsel %vm2429_vm2, %v2375_v20, 0  ;;  %v2376_v49 = vmax.bf16 %v3879_v40, %v2312_v56 }
 0x242   : > { %v2316_v60 = vadd.bf16 %v4260_v44, %v2244_v58 }
 0x243   : > { %v2381_v17 = vmax.bf16 %v3879_v40, %v2317_v18 }
 0x244   : > { %v3561_v61 = vpop.f32.mrb[56].mxu1  ;;  %v2380_v15 = vmax.bf16 %v3879_v40, %v2316_v60 }
 0x245   : > { %v1931_v62 = vpop.f32.mrb[57].mxu1 }
 0x246   : > { %v3562_v3 = vpop.f32.mrb[58].mxu1 }
 0x247   : > { %3298 = vmatpush3.bf16.xpose.msra.mxu1 %v2485_v22  ;;  %v2247_v6 = vpack.c.bf16 %v3562_v3, %v3561_v61  ;;  %v1934_v9 = vpop.f32.mrb[59].mxu1 }
 0x248   : > { %3642 = vmatprep.subr.msk.bf16.mxu1 %vm2429_vm2, %v2380_v15  ;;  %v2246_v57 = vpack.c.bf16 %v1934_v9, %v1931_v62  ;;  %v2313_v62 = vadd.bf16 %v4260_v44, %v2241_v28  ;;  %v2500_v15 = vsel %vm2429_vm2, %v2376_v49, 0 }
 0x249   : > { %v2319_v5 = vadd.bf16 %v4260_v44, %v2247_v6 }
 0x24a   : > { %v2318_v36 = vadd.bf16 %v4260_v44, %v2246_v57  ;;  %v2377_v41 = vmax.bf16 %v3879_v40, %v2313_v62 }
 0x24b   : > { %v2383_v24 = vmax.bf16 %v3879_v40, %v2319_v5 }
 0x24c   : > { %v3565_v12 = vpop.f32.mrb[60].mxu1  ;;  %v2382_v51 = vmax.bf16 %v3879_v40, %v2318_v36  ;;  %v2503_v57 = vsel %vm2429_vm2, %v2377_v41, 0 }
 0x24d   : > { %v1947_v14 = vpop.f32.mrb[61].mxu1 }
 0x24e   : > { %v3566_v39 = vpop.f32.mrb[62].mxu1 }
 0x24f   : > { %3300 = vmatpush3.bf16.xpose.msra.mxu1 %v2488_v32  ;;  %v2249_v52 = vpack.c.bf16 %v3566_v39, %v3565_v12  ;;  %v1950_v54 = vpop.f32.mrb[63].mxu1 }
 0x250   : > { %3643 = vmatprep.subr.msk.bf16.mxu1 %vm2429_vm2, %v2381_v17  ;;  %v2248_v27 = vpack.c.bf16 %v1950_v54, %v1947_v14 }
 0x251   : > { %v2321_v29 = vadd.bf16 %v4260_v44, %v2249_v52 }
 0x252   : > { %v2320_v16 = vadd.bf16 %v4260_v44, %v2248_v27 }
 0x253   : > { %v2385_v0 = vmax.bf16 %v3879_v40, %v2321_v29 }
 0x254   : > { %v4418_v38 = vpop.f32.mrb[64].mxu1  ;;  %v2384_v63 = vmax.bf16 %v3879_v40, %v2320_v16 }
 0x255   : > { %v1963_v21 = vpop.f32.mrb[65].mxu1 }
 0x256   : > { %v3570_v34 = vpop.f32.mrb[66].mxu1 }
 0x257   : > { %3302 = vmatpush3.bf16.xpose.msra.mxu1 %v2491_v33  ;;  %v2251_v37 = vpack.c.bf16 %v3570_v34, %v4418_v38  ;;  %v1966_v42 = vpop.f32.mrb[67].mxu1 }
 0x258   : > { %3644 = vmatprep.subr.msk.bf16.mxu1 %vm2429_vm2, %v2382_v51  ;;  %v2250_v43 = vpack.c.bf16 %v1966_v42, %v1963_v21 }
 0x259   : > { %v2323_v30 = vadd.bf16 %v4260_v44, %v2251_v37 }
 0x25a   : > { %v2322_v13 = vadd.bf16 %v4260_v44, %v2250_v43 }
 0x25b   : > { %v2387_v37 = vmax.bf16 %v3879_v40, %v2323_v30 }
 0x25c   : > { %v4430_v7 = vpop.f32.mrb[68].mxu1  ;;  %v2386_v17 = vmax.bf16 %v3879_v40, %v2322_v13 }
 0x25d   : > { %v4432_v11 = vpop.f32.mrb[69].mxu1  ;;  %v2533_v23 = vsel %vm2429_vm2, %v2387_v37, 0 }
 0x25e   : > { %v4440_v46 = vpop.f32.mrb[70].mxu1  ;;  %v2530_v38 = vsel %vm2429_vm2, %v2386_v17, 0 }
 0x25f   : > { %3304 = vmatpush3.bf16.xpose.msra.mxu1 %v2494_v45  ;;  %v2253_v47 = vpack.c.bf16 %v4440_v46, %v4430_v7  ;;  %v4444_v48 = vpop.f32.mrb[71].mxu1 }
 0x260   : > { %3645 = vmatprep.subr.msk.bf16.mxu1 %vm2429_vm2, %v2383_v24  ;;  %v2252_v50 = vpack.c.bf16 %v4444_v48, %v4432_v11 }
 0x262   : > { %v2324_v5 = vadd.bf16 %v4260_v44, %v2252_v50  ;;  %v2325_v50 = vadd.bf16 %v4260_v44, %v2253_v47 }
 0x264   : > { %v4451_v19 = vpop.f32.mrb[72].mxu1  ;;  %v2388_v16 = vmax.bf16 %v3879_v40, %v2324_v5 }
 0x265   : > { %v4453_v53 = vpop.f32.mrb[73].mxu1 }
 0x266   : > { %v4461_v4 = vpop.f32.mrb[74].mxu1  ;;  %v2536_v29 = vsel %vm2429_vm2, %v2388_v16, 0 }
 0x267   : > { %3306 = vmatpush3.bf16.xpose.msra.mxu1 %v2497_v2  ;;  %v2255_v58 = vpack.c.bf16 %v4461_v4, %v4451_v19  ;;  %v4465_v59 = vpop.f32.mrb[75].mxu1 }
 0x268   : > { %3646 = vmatprep.subr.msk.bf16.mxu1 %vm2429_vm2, %v2384_v63  ;;  %v2254_v60 = vpack.c.bf16 %v4465_v59, %v4453_v53 }
 0x269   : > { %v2327_v59 = vadd.bf16 %v4260_v44, %v2255_v58 }
 0x26a   : > { %v2326_v46 = vadd.bf16 %v4260_v44, %v2254_v60 }
 0x26c   : > { %v4472_v31 = vpop.f32.mrb[76].mxu1  ;;  %v2390_v17 = vmax.bf16 %v3879_v40, %v2326_v46 }
 0x26d   : > { %v4474_v61 = vpop.f32.mrb[77].mxu1 }
 0x26e   : > { %v4482_v22 = vpop.f32.mrb[78].mxu1 }
 0x26f   : > { %3308 = vmatpush3.bf16.xpose.msra.mxu1 %v2500_v15  ;;  %v2257_v3 = vpack.c.bf16 %v4482_v22, %v4472_v31  ;;  %v4486_v6 = vpop.f32.mrb[79].mxu1 }
 0x270   : > { %3647 = vmatprep.subr.msk.bf16.mxu1 %vm2429_vm2, %v2385_v0  ;;  %v2256_v9 = vpack.c.bf16 %v4486_v6, %v4474_v61 }
 0x274   : > { %v3585_v26 = vpop.f32.mrb[80].mxu1 }
 0x275   : > { %v2027_v28 = vpop.f32.mrb[81].mxu1 }
 0x276   : > { %v3586_v18 = vpop.f32.mrb[82].mxu1 }
 0x277   : > { %3310 = vmatpush3.bf16.xpose.msra.mxu1 %v2503_v57  ;;  %v2259_v12 = vpack.c.bf16 %v3586_v18, %v3585_v26  ;;  %v2030_v14 = vpop.f32.mrb[83].mxu1  ;;  %v2389_v26 = vmax.bf16 %v3879_v40, %v2325_v50 }
 0x278   : > { %v2258_v10 = vpack.c.bf16 %v2030_v14, %v2027_v28 }
 0x279   : > { %v2331_v32 = vadd.bf16 %v4260_v44, %v2259_v12  ;;  %v2539_v13 = vsel %vm2429_vm2, %v2389_v26, 0 }
 0x27a   : > { %v2330_v39 = vadd.bf16 %v4260_v44, %v2258_v10 }
 0x27b   : > { %v2395_v36 = vmax.bf16 %v3879_v40, %v2331_v32 }
 0x27c   : > { %v2394_v52 = vmax.bf16 %v3879_v40, %v2330_v39  ;;  %v3589_v54 = vpop.f32.mrb[84].mxu1 }
 0x27d   : > { %v2043_v27 = vpop.f32.mrb[85].mxu1 }
 0x27e   : > { %3648 = vmatprep.subr.msk.bf16.mxu0 %vm2429_vm2, %v2394_v52  ;;  %v3590_v21 = vpop.f32.mrb[86].mxu1  ;;  %3312 = vmatmul.mubr.msk.bf16.vlgmr.msra.gmra.mrb[128].mxu1 %vm2429_vm2, %v4275_v55  ;;  %v2542_v52 = vsel %vm2429_vm2, %v2390_v17, 0 }
 0x27f   : > { %3314 = vmatpush3.bf16.xpose.msra.mxu0 %v2530_v38  ;;  %v2261_v51 = vpack.c.bf16 %v3590_v21, %v3589_v54  ;;  %v2046_v33 = vpop.f32.mrb[87].mxu1  ;;  %3347 = vmatprep.mubr.msk.bf16.mxu1 %vm2429_vm2, %v4275_v55  ;;  %v2391_v38 = vmax.bf16 %v3879_v40, %v2327_v59  ;;  %v2328_v21 = vadd.bf16 %v4260_v44, %v2256_v9 }
 0x280   : > { %3649 = vmatprep.subr.msk.bf16.mxu0 %vm2429_vm2, %v2395_v36  ;;  %v2260_v34 = vpack.c.bf16 %v2046_v33, %v2043_v27 }
 0x281   : > { %v2333_v56 = vadd.bf16 %v4260_v44, %v2261_v51  ;;  %v2545_v51 = vsel %vm2429_vm2, %v2391_v38, 0  ;;  %v2392_v61 = vmax.bf16 %v3879_v40, %v2328_v21 }
 0x282   : > { %v2332_v42 = vadd.bf16 %v4260_v44, %v2260_v34 }
 0x283   : > { %v2397_v49 = vmax.bf16 %v3879_v40, %v2333_v56 }
 0x284   : > { %v3593_v43 = vpop.f32.mrb[88].mxu1  ;;  %v2396_v11 = vmax.bf16 %v3879_v40, %v2332_v42 }
 0x285   : > { %v2059_v1 = vpop.f32.mrb[89].mxu1 }
 0x286   : > { %v3594_v24 = vpop.f32.mrb[90].mxu1 }
 0x287   : > { %3316 = vmatpush3.bf16.xpose.msra.mxu0 %v2533_v23  ;;  %v2263_v45 = vpack.c.bf16 %v3594_v24, %v3593_v43  ;;  %v2062_v48 = vpop.f32.mrb[91].mxu1 }
 0x288   : > { %3650 = vmatprep.subr.msk.bf16.mxu0 %vm2429_vm2, %v2396_v11  ;;  %v2262_v20 = vpack.c.bf16 %v2062_v48, %v2059_v1  ;;  %v2329_v1 = vadd.bf16 %v4260_v44, %v2257_v3  ;;  %v2548_v11 = vsel %vm2429_vm2, %v2392_v61, 0 }
 0x289   : > { %v2335_v32 = vadd.bf16 %v4260_v44, %v2263_v45 }
 0x28a   : > { %v2334_v28 = vadd.bf16 %v4260_v44, %v2262_v20  ;;  %v2393_v31 = vmax.bf16 %v3879_v40, %v2329_v1 }
 0x28b   : > { %v2399_v60 = vmax.bf16 %v3879_v40, %v2335_v32 }
 0x28c   : > { %v3597_v63 = vpop.f32.mrb[92].mxu1  ;;  %v2398_v47 = vmax.bf16 %v3879_v40, %v2334_v28  ;;  %v2551_v56 = vsel %vm2429_vm2, %v2393_v31, 0 }
 0x28d   : > { %v2075_v2 = vpop.f32.mrb[93].mxu1 }
 0x28e   : > { %v3598_v62 = vpop.f32.mrb[94].mxu1 }
 0x28f   : > { %3318 = vmatpush3.bf16.xpose.msra.mxu0 %v2536_v29  ;;  %v2265_v0 = vpack.c.bf16 %v3598_v62, %v3597_v63  ;;  %v2078_v15 = vpop.f32.mrb[95].mxu1 }
 0x290   : > { %3651 = vmatprep.subr.msk.bf16.mxu0 %vm2429_vm2, %v2397_v49  ;;  %v2264_v41 = vpack.c.bf16 %v2078_v15, %v2075_v2 }
 0x291   : > { %v2337_v6 = vadd.bf16 %v4260_v44, %v2265_v0 }
 0x292   : > { %v2336_v19 = vadd.bf16 %v4260_v44, %v2264_v41 }
 0x293   : > { %v2401_v5 = vmax.bf16 %v3879_v40, %v2337_v6 }
 0x294   : > { %v4524_v57 = vpop.f32.mrb[96].mxu1  ;;  %v2400_v8 = vmax.bf16 %v3879_v40, %v2336_v19 }
 0x295   : > { %v2091_v7 = vpop.f32.mrb[97].mxu1 }
 0x296   : > { %v3602_v18 = vpop.f32.mrb[98].mxu1 }
 0x297   : > { %3320 = vmatpush3.bf16.xpose.msra.mxu0 %v2539_v13  ;;  %v2267_v12 = vpack.c.bf16 %v3602_v18, %v4524_v57  ;;  %v2094_v14 = vpop.f32.mrb[99].mxu1 }
 0x298   : > { %3652 = vmatprep.subr.msk.bf16.mxu0 %vm2429_vm2, %v2398_v47  ;;  %v2266_v10 = vpack.c.bf16 %v2094_v14, %v2091_v7 }
 0x299   : > { %v2339_v26 = vadd.bf16 %v4260_v44, %v2267_v12 }
 0x29a   : > { %v2338_v20 = vadd.bf16 %v4260_v44, %v2266_v10 }
 0x29b   : > { %v2403_v18 = vmax.bf16 %v3879_v40, %v2339_v26 }
 0x29c   : > { %v4536_v39 = vpop.f32.mrb[100].mxu1  ;;  %v2402_v49 = vmax.bf16 %v3879_v40, %v2338_v20 }
 0x29d   : > { %v4538_v53 = vpop.f32.mrb[101].mxu1 }
 0x29e   : > { %v4546_v54 = vpop.f32.mrb[102].mxu1  ;;  %v2578_v57 = vsel %vm2429_vm2, %v2402_v49, 0 }
 0x29f   : > { %3322 = vmatpush3.bf16.xpose.msra.mxu0 %v2542_v52  ;;  %v2269_v27 = vpack.c.bf16 %v4546_v54, %v4536_v39  ;;  %v2110_v30 = vpop.f32.mrb[103].mxu1 }
 0x2a0   : > { %3653 = vmatprep.subr.msk.bf16.mxu0 %vm2429_vm2, %v2399_v60  ;;  %v2268_v36 = vpack.c.bf16 %v2110_v30, %v4538_v53  ;;  %v2581_v53 = vsel %vm2429_vm2, %v2403_v18, 0 }
 0x2a2   : > { %v2340_v32 = vadd.bf16 %v4260_v44, %v2268_v36  ;;  %v2341_v36 = vadd.bf16 %v4260_v44, %v2269_v27 }
 0x2a4   : > { %v4554_v4 = vpop.f32.mrb[104].mxu1  ;;  %v2404_v38 = vmax.bf16 %v3879_v40, %v2340_v32 }
 0x2a5   : > { %v4556_v58 = vpop.f32.mrb[105].mxu1 }
 0x2a6   : > { %v4564_v33 = vpop.f32.mrb[106].mxu1  ;;  %v2584_v61 = vsel %vm2429_vm2, %v2404_v38, 0 }
 0x2a7   : > { %3324 = vmatpush3.bf16.xpose.msra.mxu0 %v2545_v51  ;;  %v2271_v34 = vpack.c.bf16 %v4564_v33, %v4554_v4  ;;  %v4568_v37 = vpop.f32.mrb[107].mxu1 }
 0x2a8   : > { %3654 = vmatprep.subr.msk.bf16.mxu0 %vm2429_vm2, %v2400_v8  ;;  %v2270_v42 = vpack.c.bf16 %v4568_v37, %v4556_v58 }
 0x2aa   : > { %v2342_v39 = vadd.bf16 %v4260_v44, %v2270_v42 }
 0x2ac   : > { %v4575_v9 = vpop.f32.mrb[108].mxu1  ;;  %v2406_v27 = vmax.bf16 %v3879_v40, %v2342_v39 }
 0x2ad   : > { %v4577_v43 = vpop.f32.mrb[109].mxu1 }
 0x2ae   : > { %v4585_v23 = vpop.f32.mrb[110].mxu1  ;;  %v2590_v58 = vsel %vm2429_vm2, %v2406_v27, 0 }
 0x2af   : > { %3326 = vmatpush3.bf16.xpose.msra.mxu0 %v2548_v11  ;;  %v2273_v24 = vpack.c.bf16 %v4585_v23, %v4575_v9  ;;  %v4589_v45 = vpop.f32.mrb[111].mxu1 }
 0x2b0   : > { %v2272_v48 = vpack.c.bf16 %v4589_v45, %v4577_v43  ;;  %3655 = vmatprep.subr.msk.bf16.mxu0 %vm2429_vm2, %v2401_v5 }
 0x2b2   : > { %v2344_v4 = vadd.bf16 %v4260_v44, %v2272_v48 }
 0x2b4   : > { %v3617_v22 = vpop.f32.mrb[112].mxu1 }
 0x2b5   : > { %v2155_v3 = vpop.f32.mrb[113].mxu1 }
 0x2b6   : > { %v3618_v16 = vpop.f32.mrb[114].mxu1 }
 0x2b7   : > { %v2275_v63 = vpack.c.bf16 %v3618_v16, %v3617_v22  ;;  %v2158_v2 = vpop.f32.mrb[115].mxu1  ;;  %3328 = vmatpush3.bf16.xpose.msra.mxu0 %v2551_v56  ;;  %v2405_v22 = vmax.bf16 %v3879_v40, %v2341_v36  ;;  %v2343_v16 = vadd.bf16 %v4260_v44, %v2271_v34  ;;  %v2408_v34 = vmax.bf16 %v3879_v40, %v2344_v4 }
 0x2b8   : > { %v2274_v50 = vpack.c.bf16 %v2158_v2, %v2155_v3 }
 0x2b9   : > { %v2347_v29 = vadd.bf16 %v4260_v44, %v2275_v63  ;;  %v2587_v54 = vsel %vm2429_vm2, %v2405_v22, 0  ;;  %v2407_v42 = vmax.bf16 %v3879_v40, %v2343_v16  ;;  %v2596_v43 = vsel %vm2429_vm2, %v2408_v34, 0 }
 0x2ba   : > { %v2346_v62 = vadd.bf16 %v4260_v44, %v2274_v50  ;;  %v2345_v50 = vadd.bf16 %v4260_v44, %v2273_v24 }
 0x2bb   : > { %v2411_v28 = vmax.bf16 %v3879_v40, %v2347_v29  ;;  %v2593_v33 = vsel %vm2429_vm2, %v2407_v42, 0  ;;  %v2423_v29 = vpop.permute.xlu0 %2422 }
 0x2bc   : > { %v2410_v0 = vmax.bf16 %v3879_v40, %v2346_v62  ;;  %v3621_v15 = vpop.f32.mrb[116].mxu1  ;;  %v2409_v45 = vmax.bf16 %v3879_v40, %v2345_v50  ;;  %v4665_v9 = vrot.slane %v2423_v29, %v2288_v35 }
 0x2bd   : > { %v2171_v41 = vpop.f32.mrb[117].mxu1 }
 0x2be   : > { %3656 = vmatprep.subr.msk.bf16.mxu1 %vm2429_vm2, %v2410_v0  ;;  %v3622_v7 = vpop.f32.mrb[118].mxu1  ;;  %3330 = vmatmul.mubr.msk.bf16.vlgmr.msra.gmra.mrb[132].mxu0 %vm2429_vm2, %v4275_v55  ;;  %v2599_v48 = vsel %vm2429_vm2, %v2409_v45, 0 }
 0x2bf   : > { %3332 = vmatpush3.bf16.xpose.msra.mxu1 %v2578_v57  ;;  %v2277_v46 = vpack.c.bf16 %v3622_v7, %v3621_v15  ;;  %v2174_v47 = vpop.f32.mrb[119].mxu1 }
 0x2c0   : > { %3657 = vmatprep.subr.msk.bf16.mxu1 %vm2429_vm2, %v2411_v28  ;;  %v2276_v13 = vpack.c.bf16 %v2174_v47, %v2171_v41 }
 0x2c1   : > { %v2349_v19 = vadd.bf16 %v4260_v44, %v2277_v46 }
 0x2c2   : > { %v2348_v12 = vadd.bf16 %v4260_v44, %v2276_v13 }
 0x2c3   : > { %v2413_v51 = vmax.bf16 %v3879_v40, %v2349_v19 }
 0x2c4   : > { %v2412_v14 = vmax.bf16 %v3879_v40, %v2348_v12  ;;  %v3625_v10 = vpop.f32.mrb[120].mxu1 }
 0x2c5   : > { %v2187_v17 = vpop.f32.mrb[121].mxu1 }
 0x2c6   : > { %v3626_v59 = vpop.f32.mrb[122].mxu1 }
 0x2c7   : > { %3334 = vmatpush3.bf16.xpose.msra.mxu1 %v2581_v53  ;;  %v2279_v60 = vpack.c.bf16 %v3626_v59, %v3625_v10  ;;  %v2190_v52 = vpop.f32.mrb[123].mxu1 }
 0x2c8   : > { %3658 = vmatprep.subr.msk.bf16.mxu1 %vm2429_vm2, %v2412_v14  ;;  %v2278_v30 = vpack.c.bf16 %v2190_v52, %v2187_v17 }
 0x2c9   : > { %v2351_v20 = vadd.bf16 %v4260_v44, %v2279_v60 }
 0x2ca   : > { %v2350_v11 = vadd.bf16 %v4260_v44, %v2278_v30  ;;  %v3880_v30 = vmov 1966171168  }
 0x2cb   : > { %v2415_v56 = vmax.bf16 %v3879_v40, %v2351_v20  ;;  %v2850_v38 = vunpack.c.l.s4 %v3880_v30 }
 0x2cc   : > { %v3629_v21 = vpop.f32.mrb[124].mxu1  ;;  %v2414_v3 = vmax.bf16 %v3879_v40, %v2350_v11 }
 0x2cd   : > { %v2203_v8 = vpop.f32.mrb[125].mxu1  ;;  %v2851_v19 = vunpack.c.0.s8 %v2850_v38 }
 0x2ce   : > { %v3630_v6 = vpop.f32.mrb[126].mxu1 }
 0x2cf   : > { %3336 = vmatpush3.bf16.xpose.msra.mxu1 %v2584_v61  ;;  %v2281_v1 = vpack.c.bf16 %v3630_v6, %v3629_v21  ;;  %v2206_v5 = vpop.f32.mrb[127].mxu1  ;;  %v2854_v21 = vsub.s32 %v2851_v19, %v4238_v25 }
 0x2d0   : > { %3659 = vmatprep.subr.msk.bf16.mxu1 %vm2429_vm2, %v2413_v51  ;;  %v2280_v31 = vpack.c.bf16 %v2206_v5, %v2203_v8 }
 0x2d1   : > { %v2353_v2 = vadd.bf16 %v4260_v44, %v2281_v1 }
 0x2d2   : > { %v2352_v37 = vadd.bf16 %v4260_v44, %v2280_v31 }
 0x2d3   : > { %v2417_v49 = vmax.bf16 %v3879_v40, %v2353_v2 }
 0x2d4   : > { %v2416_v63 = vmax.bf16 %v3879_v40, %v2352_v37 }
 0x2d7   : > { %3338 = vmatpush3.bf16.xpose.msra.mxu1 %v2587_v54 }
 0x2d8   : > { %3660 = vmatprep.subr.msk.bf16.mxu1 %vm2429_vm2, %v2414_v3 }
 0x2df   : > { %3340 = vmatpush3.bf16.xpose.msra.mxu1 %v2590_v58 }
 0x2e0   : > { %3661 = vmatprep.subr.msk.bf16.mxu1 %vm2429_vm2, %v2415_v56 }
 0x2e7   : > { %3342 = vmatpush3.bf16.xpose.msra.mxu1 %v2593_v33 }
 0x2e8   : > { %3662 = vmatprep.subr.msk.bf16.mxu1 %vm2429_vm2, %v2416_v63 }
 0x2ef   : > { %3344 = vmatpush3.bf16.xpose.msra.mxu1 %v2596_v43 }
 0x2f0   : > { %3663 = vmatprep.subr.msk.bf16.mxu1 %vm2429_vm2, %v2417_v49 }
 0x2f7   : > { %3346 = vmatpush3.bf16.xpose.msra.mxu1 %v2599_v48 }
 0x2fe   : > { %3348 = vmatmul.mubr.msk.bf16.vlgmr.msra.gmra.mrb[132].mxu1 %vm2429_vm2, %v4275_v55 }
 0x311   : > { %v2659_v44 = vpop.f32.mrb[128].mxu0 }
 0x312   : > { %v2661_v23 = vpop.f32.mrb[129].mxu0  ;;  %v2660_v62 = vadd.f32 %v2659_v44, %v4665_v9 }
 0x313   : > { %v2663_v24 = vpop.f32.mrb[130].mxu0  ;;  %v2662_v0 = vadd.f32 %v2661_v23, %v4665_v9 }
 0x314   : > { %v2664_v15 = vpop.f32.mrb[131].mxu0  ;;  %v3122_v40 = vmul.f32 -1.442695, %v2660_v62 }
 0x315   : > { %v3123_v41 = vmul.f32 -1.442695, %v2662_v0 }
 0x316   : > { %3783 = vpow2.f32 %v3122_v40 }
 0x317   : > { %3785 = vpow2.f32 %v3123_v41 }
 0x320   : > { %v3784_v26 = vpop.eup %3783 }
 0x321   : > { %v3786_v28 = vpop.eup %3785  ;;  %v2813_v55 = vadd.f32 1.0, %v3784_v26 }
 0x322   : > { %v2814_v57 = vadd.f32 1.0, %v3786_v28 }
 0x323   : > { %3787 = vrcp.f32 %v2813_v55 }
 0x324   : > { %3789 = vrcp.f32 %v2814_v57 }
 0x32d   : > { %v3788_v35 = vpop.eup %3787 }
 0x32e   : > { %v3790_v7 = vpop.eup %3789 }
 0x32f   : > { %v2845_v46 = vcombine.low %v3788_v35, %v3790_v7 }
 0x331   : > { %v2855_v61 = vrot.slane %v2845_v46, %v2854_v21 }
 0x351   : > { %v2700_v47 = vpop.f32.mrb[128].mxu1 }
 0x352   : > { %v2702_v13 = vpop.f32.mrb[129].mxu1  ;;  %v2701_v18 = vadd.f32 %v2700_v47, %v4665_v9 }
 0x353   : > { %v2704_v12 = vpop.f32.mrb[130].mxu1  ;;  %v2703_v14 = vadd.f32 %v2702_v13, %v4665_v9 }
 0x354   : > { %v2705_v10 = vpop.f32.mrb[131].mxu1  ;;  %v3124_v17 = vmul.f32 -1.442695, %v2701_v18 }
 0x355   : > { %v3125_v32 = vmul.f32 -1.442695, %v2703_v14 }
 0x356   : > { %3791 = vpow2.f32 %v3124_v17 }
 0x357   : > { %3793 = vpow2.f32 %v3125_v32 }
 0x360   : > { %v3792_v53 = vpop.eup %3791 }
 0x361   : > { %v3794_v59 = vpop.eup %3793  ;;  %v2815_v60 = vadd.f32 1.0, %v3792_v53 }
 0x362   : > { %v2816_v52 = vadd.f32 1.0, %v3794_v59 }
 0x363   : > { %3795 = vrcp.f32 %v2815_v60 }
 0x364   : > { %3797 = vrcp.f32 %v2816_v52 }
 0x36d   : > { %v3796_v8 = vpop.eup %3795 }
 0x36e   : > { %v3798_v36 = vpop.eup %3797 }
 0x36f   : > { %v2846_v51 = vcombine.low %v3796_v8, %v3798_v36 }
 0x371   : > { %v2862_v6 = vrot.slane %v2846_v51, %v2854_v21 }
 0x373   : > { %v2877_v1 = vcombine.low %v2855_v61, %v2862_v6 }
 0x375   : > { %v2885_v40 = vrot.slane %v2877_v1, %v2854_v21 }
 0x391   : > { %v2741_v5 = vpop.f32.mrb[132].mxu0 }
 0x392   : > { %v2742_v11 = vadd.f32 %v2741_v5, %v4665_v9  ;;  %v2743_v31 = vpop.f32.mrb[133].mxu0 }
 0x393   : > { %v2744_v22 = vadd.f32 %v2743_v31, %v4665_v9  ;;  %v2745_v3 = vpop.f32.mrb[134].mxu0 }
 0x394   : > { %v3126_v39 = vmul.f32 -1.442695, %v2742_v11  ;;  %v2746_v54 = vpop.f32.mrb[135].mxu0 }
 0x395   : > { %v3127_v27 = vmul.f32 -1.442695, %v2744_v22 }
 0x396   : > { %3799 = vpow2.f32 %v3126_v39 }
 0x397   : > { %3801 = vpow2.f32 %v3127_v27 }
 0x3a0   : > { %v3800_v20 = vpop.eup %3799 }
 0x3a1   : > { %v3802_v25 = vpop.eup %3801  ;;  %v2817_v16 = vadd.f32 1.0, %v3800_v20 }
 0x3a2   : > { %v2818_v56 = vadd.f32 1.0, %v3802_v25 }
 0x3a3   : > { %3803 = vrcp.f32 %v2817_v16 }
 0x3a4   : > { %3805 = vrcp.f32 %v2818_v56 }
 0x3ad   : > { %v3804_v58 = vpop.eup %3803 }
 0x3ae   : > { %v3806_v37 = vpop.eup %3805 }
 0x3af   : > { %v2847_v42 = vcombine.low %v3804_v58, %v3806_v37 }
 0x3d1   : > { %v2782_v63 = vpop.f32.mrb[132].mxu1 }
 0x3d2   : > { %v2783_v4 = vadd.f32 %v2782_v63, %v4665_v9  ;;  %v2784_v33 = vpop.f32.mrb[133].mxu1 }
 0x3d3   : > { %v2785_v34 = vadd.f32 %v2784_v33, %v4665_v9  ;;  %v2786_v2 = vpop.f32.mrb[134].mxu1  ;;  %v2869_v9 = vrot.slane %v2847_v42, %v2854_v21 }
 0x3d4   : > { %v3128_v50 = vmul.f32 -1.442695, %v2783_v4  ;;  %v2787_v49 = vpop.f32.mrb[135].mxu1 }
 0x3d5   : > { %v3129_v43 = vmul.f32 -1.442695, %v2785_v34 }
 0x3d6   : > { %3807 = vpow2.f32 %v3128_v50 }
 0x3d7   : > { %3809 = vpow2.f32 %v3129_v43 }
 0x3e0   : > { %v3808_v45 = vpop.eup %3807 }
 0x3e1   : > { %v3810_v48 = vpop.eup %3809  ;;  %v2819_v29 = vadd.f32 1.0, %v3808_v45 }
 0x3e2   : > { %v2820_v44 = vadd.f32 1.0, %v3810_v48 }
 0x3e3   : > { %3811 = vrcp.f32 %v2819_v29 }
 0x3e4   : > { %3813 = vrcp.f32 %v2820_v44 }
 0x3ed   : > { %v3812_v23 = vpop.eup %3811 }
 0x3ee   : > { %v3814_v24 = vpop.eup %3813 }
 0x3ef   : > { %v2848_v62 = vcombine.low %v3812_v23, %v3814_v24 }
 0x3f1   : > { %v2876_v0 = vrot.slane %v2848_v62, %v2854_v21 }
 0x3f3   : > { %v2878_v15 = vcombine.low %v2869_v9, %v2876_v0 }
 0x3f5   : > { %v2892_v41 = vrot.slane %v2878_v15, %v2854_v21 }
 0x3f7   : > { %v2893_v26 = vcombine.low %v2885_v40, %v2892_v41 }
 0x3f9   : > { %2895 = vst [vmem:[%s247_s16] sm:$0xff] %v2893_v26 }
 0x3fa   : > { %3828 = shalt.err (!%p3825_p3)
}
 0x3fb   : > { %s3829_s14 = scalar_lea.hbm %s4681_s20, 128  ;;  %s3833_s11 = scalar_lea.hbm %s4729_s6, 256 }
 0x3fc   : > { %p3830_p4 = scmp.ne.s32.totalorder %s4681_s20, %s3829_s14  ;;  %p3834_p9 = scmp.lt.u32.totalorder %s4681_s20, %s4729_s6 }
 0x3fd   : > { %p3835_p10 = scmp.lt.u32.totalorder %s3833_s11, %s3829_s14  ;;  %p3837_p12 = scmp.lt.u32.totalorder %s3829_s14, %s4681_s20 }
 0x3fe   : > { %p3831_p7 = pnand %p3830_p4, %p3955_p5 }
 0x3ff   : > { %p3836_p11 = por %p3835_p10, %p3834_p9 }
 0x400   : > { %p3832_p8 = pneg %p3831_p7 }
 0x401   : > { %p3838_p13 = por %p3837_p12, %p3836_p11 }
 0x403   : > { %p3839_p0 = pnand %p3838_p13, %p3832_p8 }
 0x405   : > { %3842 = shalt.err (!%p3839_p0)
}
 0x406   : > { %3664 = dma.vmem_to_hbm [thread:$0]  (%p3955_p5), %s4683_s17, 128, %s4681_s20, %s2897_s21  }
 0x407 PF: > { %p3670_p1 = scmp.ge.s32.totalorder %s3877_s26, 2  ;;  %s2923_s15 = sand.u32 1, %s3865_s23  }
 0x408   : > { %s2924_s16 = scalar_lea.sflag [#allocation4], %s2923_s15 }
 0x409   : > { %p3667_p2 = pnand %p3670_p1, %p3959_p6 }
 0x40b   : > { %3860 = dma.done.wait (!%p3667_p2), %s2924_s16, 128  }
 0x40c   : > { %3862 = vsyncadd (!%p3667_p2), %s2924_s16, 4294967168  ;;  %p18_p3 = scmp.ge.s32.totalorder %s3943_s28, 4   ;;  %s4732_s23 = smov %s3869_s24 }
 0x40d   : > { %s4733_s24 = smov %s3873_s25  ;;  %s4734_s25 = smov %s3953_s7 }
 0x40e   : > { %s4735_s26 = smov %s3943_s28  ;;  %20 = sbr.rel (!%p18_p3) target bundleno = 6 (0x6), region = 79 }
 0x415   :  { %2929 = vsyncpa [#allocation4], 1 }
 0x416   :  { %2931 = vsyncpa [#allocation4 + $0x1], 1 }

</bundles_post_ra>
